<compile_context>
chip_gen: v6e
topology: v6e:2x2x1
jax: 0.10.0
libtpu: 0.0.40
codegen_flags: <defaults>
</compile_context>

<pallas_src>
import functools
import math

import jax
import jax.numpy as jnp
from jax import lax
from jax.experimental import pallas as pl
from jax.experimental.pallas import tpu as pltpu


def _round_up(x, m):
    return ((x + m - 1) // m) * m


def _vmem_limit_bytes():
    # v7x: 64 MiB/TC -> ~48 MiB budget; v5e/v6e: 128 MiB -> 96 MiB.
    try:
        cap = int(pltpu.get_tpu_info().vmem_capacity_bytes)
    except Exception:
        cap = 64 * 1024 * 1024
    return int(min(cap * 3 // 4, 96 * 1024 * 1024))


# ----------------------------------------------------------------------------
# Kernel 1 (fused, all 3 code types): KG intent interaction + kg_agg + code sums
#   x_all    : (3, BSp, Nmax, D)  code embeddings (diag/proc/med, one gather)
#   e        : (Kp, D)            kg_leaf_intent_embd, zero-padded, resident
#   valid    : (3, BSp, Nmax, 1)  1.0 for valid code positions, 0.0 otherwise
#   g_all    : (3, BSp, Nmax, D)  gathered intent embeddings for the same codes
#   keep     : (3, Nmax, 1)       1.0 for n < N_true[type] (code-axis sum mask)
#   w1/w2    : (3, D, D)          kg_agg Linear(2D,D) split & pre-transposed
#   b        : (3, 1, D)
# Outputs: curt_enc (3, BSp, D) = sum_n tanh-agg, ori_enc (3, BSp, D) = sum_n x
# ----------------------------------------------------------------------------
def _kg_intent_kernel(x_ref, e_ref, valid_ref, g_ref, keep_ref,
                      w1_ref, w2_ref, b_ref, o_curt_ref, o_ori_ref, *, k_real):
    _, TB, NMAX, D = x_ref.shape
    Kp = e_ref.shape[0]
    M = TB * NMAX

    x3 = x_ref[0]                                                  # (TB,Nmax,D)
    x = x3.reshape(M, D)
    e = e_ref[...]                                                 # (Kp, D)

    # scores: contract last dims (no explicit transpose of e)
    s = lax.dot_general(x, e, (((1,), (1,)), ((), ())),
                        preferred_element_type=jnp.float32)        # (M, Kp)
    if k_real < Kp:
        # -1e9 bias on padded intent columns BEFORE the softmax (lane-dense Kp).
        kbias = jnp.where(
            lax.broadcasted_iota(jnp.int32, (1, Kp), 1) < k_real, 0.0, -1e9)
        s = s + kbias
    s = s - jnp.max(s, axis=-1, keepdims=True)
    p = jnp.exp(s)
    # approx reciprocal: ~1e-4 rel. error vs exact f32 divide (EUP slot).
    p = p * pl.reciprocal(jnp.sum(p, axis=-1, keepdims=True), approx=True)
    # masked_fill(mask, 0) -> multiplicative 0/1 validity mask.
    p = p * valid_ref[0].reshape(M, 1)

    inter = jnp.dot(p.astype(e.dtype), e,
                    preferred_element_type=jnp.float32)            # (M, D)
    g = g_ref[0].reshape(M, D)
    # Linear(2D,D) as two accumulated dots: no lane-axis concat copy.
    y = jnp.tanh(
        jnp.dot(inter.astype(w1_ref.dtype), w1_ref[0],
                preferred_element_type=jnp.float32)
        + jnp.dot(g, w2_ref[0], preferred_element_type=jnp.float32)
        + b_ref[0])                                                # (M, D)
    y3 = y.reshape(TB, NMAX, D)

    o_curt_ref[0] = jnp.sum(y3 * keep_ref[...], axis=1).astype(o_curt_ref.dtype)
    o_ori_ref[0] = jnp.sum(x3.astype(jnp.float32), axis=1).astype(o_ori_ref.dtype)


def kg_intent_interact_fused(x_all, kg_e, valid_all, g_all, keep_all,
                             w1_all, w2_all, b_all, *, k_real, tb,
                             compute_dtype, vmem_limit):
    SEG, BSp, Nmax, D = x_all.shape
    Kp = kg_e.shape[0]
    cd = compute_dtype
    kern = functools.partial(_kg_intent_kernel, k_real=k_real)
    grid = (BSp // tb, SEG)        # big even axis leads -> balances v7x 2 TCs
    curt, ori = pl.pallas_call(
        kern,
        out_shape=(jax.ShapeDtypeStruct((SEG, BSp, D), jnp.float32),
                   jax.ShapeDtypeStruct((SEG, BSp, D), jnp.float32)),
        grid=grid,
        in_specs=[
            pl.BlockSpec((1, tb, Nmax, D), lambda i, s: (s, i, 0, 0)),
            pl.BlockSpec((Kp, D), lambda i, s: (0, 0)),   # resident e table
            pl.BlockSpec((1, tb, Nmax, 1), lambda i, s: (s, i, 0, 0)),
            pl.BlockSpec((1, tb, Nmax, D), lambda i, s: (s, i, 0, 0)),
            pl.BlockSpec((1, Nmax, 1), lambda i, s: (s, 0, 0)),
            pl.BlockSpec((1, D, D), lambda i, s: (s, 0, 0)),
            pl.BlockSpec((1, D, D), lambda i, s: (s, 0, 0)),
            pl.BlockSpec((1, 1, D), lambda i, s: (s, 0, 0)),
        ],
        out_specs=(pl.BlockSpec((1, tb, D), lambda i, s: (s, i, 0)),
                   pl.BlockSpec((1, tb, D), lambda i, s: (s, i, 0))),
        compiler_params=pltpu.CompilerParams(
            dimension_semantics=("parallel", "parallel"),
            vmem_limit_bytes=vmem_limit),
    )(x_all.astype(cd), kg_e.astype(cd), valid_all, g_all.astype(cd),
      keep_all, w1_all.astype(cd), w2_all.astype(cd), b_all)
    return curt, ori


# ----------------------------------------------------------------------------
# Kernel 2: batched masked single-head visit self-attention.
# Causal (lower-triangular) mask generated in-kernel via iota (no mask DMA).
# ----------------------------------------------------------------------------
def _attn_kernel(q_ref, k_ref, v_ref, o_ref, *, scale):
    q = q_ref[...]                                                 # (TB, S, D)
    k = k_ref[...]
    v = v_ref[...]
    S = q.shape[1]
    s = jnp.einsum('bqd,bkd->bqk', q, k,
                   preferred_element_type=jnp.float32) * scale     # (TB, S, S)
    row = lax.broadcasted_iota(jnp.int32, (1, S, S), 1)
    col = lax.broadcasted_iota(jnp.int32, (1, S, S), 2)
    s = jnp.where(col <= row, s, -1e9)
    s = s - jnp.max(s, axis=-1, keepdims=True)
    p = jnp.exp(s)
    p = p * pl.reciprocal(jnp.sum(p, axis=-1, keepdims=True), approx=True)
    o_ref[...] = jnp.einsum('bqk,bkd->bqd', p.astype(v.dtype), v,
                            preferred_element_type=jnp.float32).astype(o_ref.dtype)


def masked_self_attention(q, k, v, *, compute_dtype, vmem_limit):
    """q,k,v:(B,S,D) -> (B,S,D) with a causal mask. Batched grid steps."""
    B, S, D = q.shape
    tba = min(B, 16)
    Bp = _round_up(B, tba)
    cd = compute_dtype
    if Bp != B:
        pad = ((0, Bp - B), (0, 0), (0, 0))
        q = jnp.pad(q, pad); k = jnp.pad(k, pad); v = jnp.pad(v, pad)
    kern = functools.partial(_attn_kernel, scale=1.0 / math.sqrt(D))
    out = pl.pallas_call(
        kern,
        out_shape=jax.ShapeDtypeStruct((Bp, S, D), jnp.float32),
        grid=(Bp // tba,),
        in_specs=[pl.BlockSpec((tba, S, D), lambda b: (b, 0, 0)),
                  pl.BlockSpec((tba, S, D), lambda b: (b, 0, 0)),
                  pl.BlockSpec((tba, S, D), lambda b: (b, 0, 0))],
        out_specs=pl.BlockSpec((tba, S, D), lambda b: (b, 0, 0)),
        compiler_params=pltpu.CompilerParams(
            dimension_semantics=("parallel",),
            vmem_limit_bytes=vmem_limit),
    )(q.astype(cd), k.astype(cd), v.astype(cd))
    return out[:B]


# ----------------------------------------------------------------------------
# Kernel 3: projection on the (pre-transposed, 128-padded) med table + mask.
# Resident-weight path streams (D,Vp) exactly once when it fits VMEM.
# ----------------------------------------------------------------------------
def _logits_kernel(x_ref, w_ref, m_ref, o_ref):
    y = jnp.dot(x_ref[...], w_ref[...], preferred_element_type=jnp.float32)
    o_ref[...] = (y * m_ref[...]).astype(o_ref.dtype)


def med_logits(x, med_proj_t, visit_mask, *, compute_dtype, vmem_limit):
    """x:(B,S,D), med_proj_t:(D,Vp) Vp%128==0, visit_mask:(B,S) -> (B,S,Vp)."""
    B, S, D = x.shape
    Vp = med_proj_t.shape[1]
    BS = B * S
    cd = compute_dtype
    tm = min(512, _round_up(BS, 8))
    BSp = _round_up(BS, tm)
    x2 = x.reshape(BS, D)
    m2 = visit_mask.astype(jnp.float32).reshape(BS, 1)
    if BSp != BS:
        x2 = jnp.pad(x2, ((0, BSp - BS), (0, 0)))
        m2 = jnp.pad(m2, ((0, BSp - BS), (0, 0)))
    x2 = x2.astype(cd)
    w = med_proj_t.astype(cd)
    isz = jnp.dtype(cd).itemsize
    resident_bytes = D * Vp * isz + 2 * tm * (D * isz + Vp * 4 + 4)
    if resident_bytes <= vmem_limit // 2:
        # weight resident: streamed exactly once, grid only over row tiles.
        out = pl.pallas_call(
            _logits_kernel,
            out_shape=jax.ShapeDtypeStruct((BSp, Vp), jnp.float32),
            grid=(BSp // tm,),
            in_specs=[pl.BlockSpec((tm, D), lambda i: (i, 0)),
                      pl.BlockSpec((D, Vp), lambda i: (0, 0)),
                      pl.BlockSpec((tm, 1), lambda i: (i, 0))],
            out_specs=pl.BlockSpec((tm, Vp), lambda i: (i, 0)),
            compiler_params=pltpu.CompilerParams(
                dimension_semantics=("parallel",),
                vmem_limit_bytes=vmem_limit),
        )(x2, w, m2)
    else:
        tv = 256 if Vp % 256 == 0 else 128
        out = pl.pallas_call(
            _logits_kernel,
            out_shape=jax.ShapeDtypeStruct((BSp, Vp), jnp.float32),
            grid=(BSp // tm, Vp // tv),
            in_specs=[pl.BlockSpec((tm, D), lambda i, j: (i, 0)),
                      pl.BlockSpec((D, tv), lambda i, j: (0, j)),
                      pl.BlockSpec((tm, 1), lambda i, j: (i, 0))],
            out_specs=pl.BlockSpec((tm, tv), lambda i, j: (i, j)),
            compiler_params=pltpu.CompilerParams(
                dimension_semantics=("parallel", "parallel"),
                vmem_limit_bytes=vmem_limit),
        )(x2, w, m2)
    return out[:BS].reshape(B, S, Vp)


# ----------------------------------------------------------------------------
# Parameter init (deterministic, synthetic) + one-time prep (hoisted work).
# ----------------------------------------------------------------------------
def _xavier(key, out_dim, in_dim):
    lim = math.sqrt(6.0 / (in_dim + out_dim))
    return jax.random.uniform(key, (out_dim, in_dim), jnp.float32, -lim, lim)


def init_params(key, voc, emb_dim, n_nodes, n_intents):
    D = emb_dim
    ks = list(jax.random.split(key, 24))
    p = {}

    def emb_table(k, rows, pad_idx):
        t = jax.random.normal(k, (rows, D), jnp.float32)
        return t.at[pad_idx].set(0.0)

    p["diag_emb"] = emb_table(ks[0], voc[0] + 3, voc[0] + 2)
    p["proc_emb"] = emb_table(ks[1], voc[1] + 3, voc[1] + 2)
    p["med_emb"] = emb_table(ks[2], voc[2] + 3, voc[2] + 2)

    p["ori_agg_w"] = _xavier(ks[3], D, 3 * D);  p["ori_agg_b"] = jnp.zeros((D,))
    p["curt_agg_w"] = _xavier(ks[4], D, 3 * D); p["curt_agg_b"] = jnp.zeros((D,))
    p["med_agg_w"] = _xavier(ks[5], D, 2 * D);  p["med_agg_b"] = jnp.zeros((D,))

    p["diag_kg_agg_w"] = _xavier(ks[6], D, 2 * D); p["diag_kg_agg_b"] = jnp.zeros((D,))
    p["proc_kg_agg_w"] = _xavier(ks[7], D, 2 * D); p["proc_kg_agg_b"] = jnp.zeros((D,))
    p["med_kg_agg_w"] = _xavier(ks[8], D, 2 * D);  p["med_kg_agg_b"] = jnp.zeros((D,))

    p["all_embed"] = _xavier(ks[9], n_nodes, D)
    p["latent_emb"] = _xavier(ks[10], n_intents, D)

    # visit self-attention (single head)
    p["wq"] = _xavier(ks[11], D, D)
    p["wk"] = _xavier(ks[12], D, D)
    p["wv"] = _xavier(ks[13], D, D)
    p["wfc"] = _xavier(ks[14], D, D); p["bfc"] = jnp.zeros((D,))
    p["ln_g"] = jnp.ones((D,)); p["ln_b"] = jnp.zeros((D,))
    return p


def prepare_params(params, voc, emb_dim):
    """One-time prep: combined gather table, split/transposed kg_agg weights,
    128-padded med projection — hoisted out of the per-call forward.
    NOTE: production emb_dim (128 in the reference) is already lane-aligned;
    if a non-multiple-of-128 D is used in production, pad D here as well."""
    D = emb_dim
    prep = dict(params)

    # combined code-embedding table: one gather yields the stacked slabs.
    prep["code_table"] = jnp.concatenate(
        [params["diag_emb"], params["proc_emb"], params["med_emb"]], axis=0)
    prep["code_offsets"] = (0, voc[0] + 3, voc[0] + 3 + voc[1] + 3)

    # kg_agg Linear(2D->D): split into two (D,D) slabs, pre-transposed, stacked.
    def split_t(w):                  # w: (D, 2D)
        return jnp.transpose(w[:, :D]), jnp.transpose(w[:, D:])
    d1, d2 = split_t(params["diag_kg_agg_w"])
    p1, p2 = split_t(params["proc_kg_agg_w"])
    m1, m2 = split_t(params["med_kg_agg_w"])
    prep["kg_agg_w1_all"] = jnp.stack([d1, p1, m1], axis=0)        # (3, D, D)
    prep["kg_agg_w2_all"] = jnp.stack([d2, p2, m2], axis=0)        # (3, D, D)
    prep["kg_agg_b_all"] = jnp.stack([
        params["diag_kg_agg_b"].reshape(1, D),
        params["proc_kg_agg_b"].reshape(1, D),
        params["med_kg_agg_b"].reshape(1, D)], axis=0)             # (3, 1, D)

    # med projection table: pre-transpose + 128-pad columns (lane-dense stores).
    V = voc[2]
    Vp = max(128, _round_up(V, 128))
    med_t = jnp.transpose(params["med_emb"][:V, :])                # (D, V)
    prep["med_proj_t"] = jnp.pad(med_t, ((0, 0), (0, Vp - V)))     # (D, Vp)
    return prep


def _linear(x, w, b):
    return jnp.dot(x, jnp.transpose(w)) + b


def _layer_norm(x, g, b, eps=1e-5):
    mu = jnp.mean(x, axis=-1, keepdims=True)
    var = jnp.mean((x - mu) ** 2, axis=-1, keepdims=True)
    return (x - mu) / jnp.sqrt(var + eps) * g + b


def _pick_code_tile(bs, nmax):
    tb = max(8, (512 // max(nmax, 1)) // 8 * 8)   # ~512 matmul rows / step
    tb = min(tb, 256)
    tb = min(tb, _round_up(bs, 8))
    return max(tb, 8)


# ----------------------------------------------------------------------------
# IntentKG forward (glue in JAX, hot paths in Pallas).
# ----------------------------------------------------------------------------
def intentkg_forward(params, diseases, procedures, medications,
                     d_mask, p_mask, m_mask, seq_length, voc, emb_dim,
                     sim_regularity=0.0001, codeMI_regularity=0.01,
                     compute_dtype=jnp.float32):
    # compute_dtype=jnp.bfloat16 halves streamed bytes and ~2x MXU rate on
    # v6e/v7x, but breaks exact f32 parity — gate behind a tolerance test.
    D = emb_dim
    B, S, Nm = medications.shape
    Nd = diseases.shape[2]
    Np = procedures.shape[2]
    K = voc[0] + voc[1] + voc[2]
    MED_PAD = voc[2] + 2
    V = voc[2]
    vmem_limit = _vmem_limit_bytes()

    # shift medications by one visit, prepend PAD visit
    new_medication = jnp.concatenate(
        [jnp.full((B, 1, Nm), MED_PAD, dtype=medications.dtype),
         medications[:, :-1, :]], axis=1)
    new_m_mask = jnp.concatenate(
        [jnp.full((B, 1, Nm), -1e9, dtype=jnp.float32),
         m_mask[:, :-1, :]], axis=1)

    # KG GNN:
    # TODO(synk): GraphConv (self.kg_gcn) source is not provided; use a
    # deterministic intent-attention aggregation stand-in and intent_cor = 0.
    kg_leaf_emb = params["all_embed"][:K]
    latent = params["latent_emb"]
    att = jax.nn.softmax(jnp.dot(kg_leaf_emb, jnp.transpose(latent)), axis=-1)
    kg_leaf_intent_embd = kg_leaf_emb + jnp.dot(att, latent)      # (K, D)
    intent_cor = jnp.float32(0.0)

    # lane-dense K: pad intent table rows to a 128 multiple (padded columns get
    # a -1e9 score bias in-kernel).
    Kp = max(128, _round_up(K, 128))
    kg_e_pad = jnp.pad(kg_leaf_intent_embd, ((0, Kp - K), (0, 0)))

    # combined intent gather table (same row layout / offsets as code_table).
    zpad = jnp.zeros((3, D), jnp.float32)
    intent_table = jnp.concatenate([
        kg_leaf_intent_embd[:voc[0]], zpad,
        kg_leaf_intent_embd[voc[0]:voc[0] + voc[1]], zpad,
        kg_leaf_intent_embd[voc[0] + voc[1]:], zpad], axis=0)

    BS = B * S
    Nmax = _round_up(max(Nd, Np, Nm), 8)
    tb = _pick_code_tile(BS, Nmax)
    BSp = _round_up(BS, tb)
    off = params["code_offsets"]

    # pad the INT code indices (not float slabs) to (BSp, Nmax), offset into the
    # combined tables, then do a single gather per table.
    def prep_codes(codes, n, pad_tok, offset):
        c = codes.reshape(BS, n).astype(jnp.int32)
        c = jnp.pad(c, ((0, BSp - BS), (0, Nmax - n)), constant_values=pad_tok)
        return c + offset

    codes_all = jnp.stack([
        prep_codes(diseases, Nd, voc[0] + 2, off[0]),
        prep_codes(procedures, Np, voc[1] + 2, off[1]),
        prep_codes(new_medication, Nm, voc[2] + 2, off[2])], axis=0)  # (3,BSp,Nmax)

    def prep_valid(mask, n):
        v = (mask.reshape(BS, n) == 0.0).astype(jnp.float32)
        return jnp.pad(v, ((0, BSp - BS), (0, Nmax - n)))

    valid_all = jnp.stack([prep_valid(d_mask, Nd), prep_valid(p_mask, Np),
                           prep_valid(new_m_mask, Nm)], axis=0)[..., None]

    keep_all = (jnp.arange(Nmax)[None, :]
                < jnp.array([Nd, Np, Nm])[:, None]).astype(jnp.float32)[..., None]

    x_all = params["code_table"][codes_all]       # (3,BSp,Nmax,D)
    g_all = intent_table[codes_all]               # (3,BSp,Nmax,D)
    # TODO(synk): g_all could be gathered in-kernel from the resident e table
    # (halves streamed bytes) — needs an XLU-vs-DMA benchmark; kept explicit.

    curt_enc_all, ori_enc_all = kg_intent_interact_fused(
        x_all, kg_e_pad, valid_all, g_all, keep_all,
        params["kg_agg_w1_all"], params["kg_agg_w2_all"], params["kg_agg_b_all"],
        k_real=K, tb=tb, compute_dtype=compute_dtype, vmem_limit=vmem_limit)

    curt_diag_enc = curt_enc_all[0, :BS].reshape(B, S, D)
    curt_proc_enc = curt_enc_all[1, :BS].reshape(B, S, D)
    curt_med_enc = curt_enc_all[2, :BS].reshape(B, S, D)
    ori_diag_enc = ori_enc_all[0, :BS].reshape(B, S, D)
    ori_proc_enc = ori_enc_all[1, :BS].reshape(B, S, D)
    ori_med_enc = ori_enc_all[2, :BS].reshape(B, S, D)

    curt_visit_enc = jnp.tanh(_linear(
        jnp.concatenate([curt_diag_enc, curt_proc_enc, curt_med_enc], axis=-1),
        params["curt_agg_w"], params["curt_agg_b"]))
    original_visit_enc = _linear(
        jnp.concatenate([ori_diag_enc, ori_proc_enc, ori_med_enc], axis=-1),
        params["ori_agg_w"], params["ori_agg_b"])

    # TODO(synk): MyCLUB (self.club_mi) source is not provided; code MI loss = 0.
    code_mi_loss = jnp.float32(0.0)

    new_visit_rep = original_visit_enc + curt_visit_enc
    visit_mask = (jnp.arange(S)[None, :] < seq_length[:, None]).astype(jnp.float32)
    new_med_rep = _linear(jnp.concatenate([ori_med_enc, curt_med_enc], axis=-1),
                          params["med_agg_w"], params["med_agg_b"])

    # visit self-attention with lower-triangular (in-kernel) mask.
    # TODO(synk): exact MultiHeadAttention class not provided; standard 1-head
    # SDPA with Q/K/V + fc projections, residual and LayerNorm is used.
    q = _linear(new_visit_rep, params["wq"], jnp.zeros((D,)))
    k = _linear(new_med_rep, params["wk"], jnp.zeros((D,)))
    v = _linear(new_med_rep, params["wv"], jnp.zeros((D,)))
    attn_out = masked_self_attention(q, k, v, compute_dtype=compute_dtype,
                                     vmem_limit=vmem_limit)        # Pallas
    attn_out = _linear(attn_out, params["wfc"], params["bfc"]) + new_visit_rep
    visit_rep = _layer_norm(attn_out, params["ln_g"], params["ln_b"])

    # final projection onto medication embedding table + visit mask (Pallas,
    # resident lane-dense 128-padded projection, sliced back to V).
    visit_output = med_logits(visit_rep, params["med_proj_t"], visit_mask,
                              compute_dtype=compute_dtype,
                              vmem_limit=vmem_limit)[:, :, :V]

    # neg_pred_prob outer-product einsum in the reference is dead code -> removed.
    return (visit_output, 0,
            codeMI_regularity * code_mi_loss,
            sim_regularity * intent_cor)


# ----------------------------------------------------------------------------
# Synthetic deterministic inputs.
# ----------------------------------------------------------------------------
def make_codes(key, B, S, N, vocab, pad_tok, seq_len):
    kc, ki = jax.random.split(key)
    cnt = jax.random.randint(kc, (B, S), 1, N + 1)
    valid_visit = jnp.arange(S)[None, :] < seq_len[:, None]
    cnt = jnp.where(valid_visit, cnt, 0)
    idx = jax.random.randint(ki, (B, S, N), 0, vocab)
    pos = jnp.arange(N)[None, None, :]
    valid = pos < cnt[..., None]
    codes = jnp.where(valid, idx, pad_tok).astype(jnp.int32)
    mask = jnp.where(valid, 0.0, -1e9).astype(jnp.float32)
    return codes, mask


if __name__ == "__main__":
    voc = (10, 8, 6)          # (diag, proc, med) vocab sizes
    emb_dim = 32
    n_intents = 4
    kg_leaf = sum(voc)
    n_nodes = kg_leaf + 6     # a few extra KG entities
    B, S = 2, 4
    Nd, Np, Nm = 6, 5, 4

    key = jax.random.PRNGKey(0)
    kp, kd, kpp, km = jax.random.split(key, 4)
    params = init_params(kp, voc, emb_dim, n_nodes, n_intents)
    params = prepare_params(params, voc, emb_dim)   # one-time hoisted prep

    seq_length = jnp.array([4, 2], dtype=jnp.int32)
    diseases, d_mask = make_codes(kd, B, S, Nd, voc[0], voc[0] + 2, seq_length)
    procedures, p_mask = make_codes(kpp, B, S, Np, voc[1], voc[1] + 2, seq_length)
    medications, m_mask = make_codes(km, B, S, Nm, voc[2], voc[2] + 2, seq_length)

    out = intentkg_forward(params, diseases, procedures, medications,
                           d_mask, p_mask, m_mask, seq_length, voc, emb_dim)
    visit_output = jax.block_until_ready(out[0])
    assert visit_output.shape == (B, S, voc[2])
    print("KERNEL_OK")
</pallas_src>

<mosaic_0001>
module attributes {stable_mosaic.version = 11 : i64} {
  func.func @_kg_intent_kernel(%arg0: i32, %arg1: i32, %arg2: memref<1x8x8x32xf32, #tpu.memory_space<vmem>>, %arg3: memref<128x32xf32, #tpu.memory_space<vmem>>, %arg4: memref<1x8x8x1xf32, #tpu.memory_space<vmem>>, %arg5: memref<1x8x8x32xf32, #tpu.memory_space<vmem>>, %arg6: memref<1x8x1xf32, #tpu.memory_space<vmem>>, %arg7: memref<1x32x32xf32, #tpu.memory_space<vmem>>, %arg8: memref<1x32x32xf32, #tpu.memory_space<vmem>>, %arg9: memref<1x1x32xf32, #tpu.memory_space<vmem>>, %arg10: memref<1x8x32xf32, #tpu.memory_space<vmem>>, %arg11: memref<1x8x32xf32, #tpu.memory_space<vmem>>) attributes {dimension_semantics = [#tpu.dimension_semantics<parallel>, #tpu.dimension_semantics<parallel>], iteration_bounds = array<i64: 1, 3>, scalar_prefetch = 0 : i64, scratch_operands = 0 : i64, tpu.core_type = #tpu.core_type<tc>, window_params = [{transform_indices = @transform_0, window_bounds = array<i64: 1, 8, 8, 32>}, {pipeline_mode = #tpu.pipeline_mode<synchronous>, transform_indices = @transform_1, window_bounds = array<i64: 128, 32>}, {transform_indices = @transform_2, window_bounds = array<i64: 1, 8, 8, 1>}, {transform_indices = @transform_3, window_bounds = array<i64: 1, 8, 8, 32>}, {transform_indices = @transform_4, window_bounds = array<i64: 1, 8, 1>}, {transform_indices = @transform_5, window_bounds = array<i64: 1, 32, 32>}, {transform_indices = @transform_6, window_bounds = array<i64: 1, 32, 32>}, {transform_indices = @transform_7, window_bounds = array<i64: 1, 1, 32>}, {transform_indices = @transform_8, window_bounds = array<i64: 1, 8, 32>}, {transform_indices = @transform_9, window_bounds = array<i64: 1, 8, 32>}]} {
    %c0 = arith.constant 0 : index
    %c0_0 = arith.constant 0 : index
    %c0_1 = arith.constant 0 : index
    %c0_2 = arith.constant 0 : index
    %0 = vector.load %arg2[%c0, %c0_0, %c0_1, %c0_2] : memref<1x8x8x32xf32, #tpu.memory_space<vmem>>, vector<1x8x8x32xf32>
    %1 = vector.shape_cast %0 : vector<1x8x8x32xf32> to vector<8x8x32xf32>
    %2 = vector.shape_cast %1 : vector<8x8x32xf32> to vector<64x32xf32>
    %c0_3 = arith.constant 0 : index
    %c0_4 = arith.constant 0 : index
    %3 = vector.load %arg3[%c0_3, %c0_4] : memref<128x32xf32, #tpu.memory_space<vmem>>, vector<128x32xf32>
    %cst = arith.constant dense<0.000000e+00> : vector<64x128xf32>
    %4 = tpu.matmul %2, %3, %cst {dimension_numbers = #tpu.dot_dimension_numbers<[1], [1], [0], [0], [0, 0, 1, 0], [], []>} : vector<64x32xf32>, vector<128x32xf32>, vector<64x128xf32> -> vector<64x128xf32>
    %5 = tpu.iota {dimensions = array<i32: 1>} : vector<1x128xi32>
    %c24_i32 = arith.constant 24 : i32
    %6 = vector.broadcast %c24_i32 : i32 to vector<1x128xi32>
    %7 = arith.cmpi slt, %5, %6 : vector<1x128xi32>
    %cst_5 = arith.constant 0.000000e+00 : f32
    %cst_6 = arith.constant -1.000000e+09 : f32
    %8 = vector.broadcast %cst_5 : f32 to vector<1x128xf32>
    %9 = vector.broadcast %cst_6 : f32 to vector<1x128xf32>
    %10 = arith.select %7, %8, %9 : vector<1x128xi1>, vector<1x128xf32>
    %11 = vector.broadcast %10 : vector<1x128xf32> to vector<64x128xf32>
    %12 = arith.addf %4, %11 : vector<64x128xf32>
    %cst_7 = arith.constant dense<0xFF800000> : vector<64xf32>
    %13 = vector.multi_reduction <maximumf>, %12, %cst_7 [1] : vector<64x128xf32> to vector<64xf32>
    %14 = vector.shape_cast %13 : vector<64xf32> to vector<64x1xf32>
    %15 = vector.broadcast %14 : vector<64x1xf32> to vector<64x128xf32>
    %16 = arith.subf %12, %15 : vector<64x128xf32>
    %17 = math.exp %16 : vector<64x128xf32>
    %cst_8 = arith.constant dense<0.000000e+00> : vector<64xf32>
    %18 = vector.multi_reduction <add>, %17, %cst_8 [1] : vector<64x128xf32> to vector<64xf32>
    %19 = vector.shape_cast %18 : vector<64xf32> to vector<64x1xf32>
    %20 = tpu.reciprocal %19 {approx = true} : vector<64x1xf32> -> vector<64x1xf32>
    %21 = vector.broadcast %20 : vector<64x1xf32> to vector<64x128xf32>
    %22 = arith.mulf %17, %21 : vector<64x128xf32>
    %c0_9 = arith.constant 0 : index
    %c0_10 = arith.constant 0 : index
    %c0_11 = arith.constant 0 : index
    %c0_12 = arith.constant 0 : index
    %23 = vector.load %arg4[%c0_9, %c0_10, %c0_11, %c0_12] : memref<1x8x8x1xf32, #tpu.memory_space<vmem>>, vector<1x8x8x1xf32>
    %24 = vector.shape_cast %23 : vector<1x8x8x1xf32> to vector<8x8x1xf32>
    %25 = vector.shape_cast %24 : vector<8x8x1xf32> to vector<64x1xf32>
    %26 = vector.broadcast %25 : vector<64x1xf32> to vector<64x128xf32>
    %27 = arith.mulf %22, %26 : vector<64x128xf32>
    %cst_13 = arith.constant dense<0.000000e+00> : vector<64x32xf32>
    %28 = tpu.matmul %27, %3, %cst_13 {dimension_numbers = #tpu.dot_dimension_numbers<[1], [0], [0], [1], [0, 0, 1, 1], [], []>} : vector<64x128xf32>, vector<128x32xf32>, vector<64x32xf32> -> vector<64x32xf32>
    %c0_14 = arith.constant 0 : index
    %c0_15 = arith.constant 0 : index
    %c0_16 = arith.constant 0 : index
    %c0_17 = arith.constant 0 : index
    %29 = vector.load %arg5[%c0_14, %c0_15, %c0_16, %c0_17] : memref<1x8x8x32xf32, #tpu.memory_space<vmem>>, vector<1x8x8x32xf32>
    %30 = vector.shape_cast %29 : vector<1x8x8x32xf32> to vector<8x8x32xf32>
    %31 = vector.shape_cast %30 : vector<8x8x32xf32> to vector<64x32xf32>
    %c0_18 = arith.constant 0 : index
    %c0_19 = arith.constant 0 : index
    %c0_20 = arith.constant 0 : index
    %32 = vector.load %arg7[%c0_18, %c0_19, %c0_20] : memref<1x32x32xf32, #tpu.memory_space<vmem>>, vector<1x32x32xf32>
    %33 = vector.shape_cast %32 : vector<1x32x32xf32> to vector<32x32xf32>
    %cst_21 = arith.constant dense<0.000000e+00> : vector<64x32xf32>
    %34 = tpu.matmul %28, %33, %cst_21 {dimension_numbers = #tpu.dot_dimension_numbers<[1], [0], [0], [1], [0, 0, 1, 1], [], []>} : vector<64x32xf32>, vector<32x32xf32>, vector<64x32xf32> -> vector<64x32xf32>
    %c0_22 = arith.constant 0 : index
    %c0_23 = arith.constant 0 : index
    %c0_24 = arith.constant 0 : index
    %35 = vector.load %arg8[%c0_22, %c0_23, %c0_24] : memref<1x32x32xf32, #tpu.memory_space<vmem>>, vector<1x32x32xf32>
    %36 = vector.shape_cast %35 : vector<1x32x32xf32> to vector<32x32xf32>
    %cst_25 = arith.constant dense<0.000000e+00> : vector<64x32xf32>
    %37 = tpu.matmul %31, %36, %cst_25 {dimension_numbers = #tpu.dot_dimension_numbers<[1], [0], [0], [1], [0, 0, 1, 1], [], []>} : vector<64x32xf32>, vector<32x32xf32>, vector<64x32xf32> -> vector<64x32xf32>
    %38 = arith.addf %34, %37 : vector<64x32xf32>
    %c0_26 = arith.constant 0 : index
    %c0_27 = arith.constant 0 : index
    %c0_28 = arith.constant 0 : index
    %39 = vector.load %arg9[%c0_26, %c0_27, %c0_28] : memref<1x1x32xf32, #tpu.memory_space<vmem>>, vector<1x1x32xf32>
    %40 = vector.shape_cast %39 : vector<1x1x32xf32> to vector<1x32xf32>
    %41 = vector.broadcast %40 : vector<1x32xf32> to vector<64x32xf32>
    %42 = arith.addf %38, %41 : vector<64x32xf32>
    %43 = math.tanh %42 : vector<64x32xf32>
    %44 = vector.shape_cast %43 : vector<64x32xf32> to vector<8x8x32xf32>
    %c0_29 = arith.constant 0 : index
    %c0_30 = arith.constant 0 : index
    %c0_31 = arith.constant 0 : index
    %45 = vector.load %arg6[%c0_29, %c0_30, %c0_31] : memref<1x8x1xf32, #tpu.memory_space<vmem>>, vector<1x8x1xf32>
    %46 = vector.broadcast %45 : vector<1x8x1xf32> to vector<8x8x32xf32>
    %47 = arith.mulf %44, %46 : vector<8x8x32xf32>
    %cst_32 = arith.constant dense<0.000000e+00> : vector<8x32xf32>
    %48 = vector.multi_reduction <add>, %47, %cst_32 [1] : vector<8x8x32xf32> to vector<8x32xf32>
    %c0_33 = arith.constant 0 : index
    %c0_34 = arith.constant 0 : index
    %c0_35 = arith.constant 0 : index
    %49 = vector.load %arg10[%c0_33, %c0_34, %c0_35] : memref<1x8x32xf32, #tpu.memory_space<vmem>>, vector<1x8x32xf32>
    %50 = vector.shape_cast %49 : vector<1x8x32xf32> to vector<8x32xf32>
    %51 = vector.shape_cast %48 : vector<8x32xf32> to vector<1x8x32xf32>
    tpu.vector_store %arg10[%c0_33, %c0_34, %c0_35], %51 {strides = array<i32>} : memref<1x8x32xf32, #tpu.memory_space<vmem>>, vector<1x8x32xf32>,
    %cst_36 = arith.constant dense<0.000000e+00> : vector<8x32xf32>
    %52 = vector.multi_reduction <add>, %1, %cst_36 [1] : vector<8x8x32xf32> to vector<8x32xf32>
    %c0_37 = arith.constant 0 : index
    %c0_38 = arith.constant 0 : index
    %c0_39 = arith.constant 0 : index
    %53 = vector.load %arg11[%c0_37, %c0_38, %c0_39] : memref<1x8x32xf32, #tpu.memory_space<vmem>>, vector<1x8x32xf32>
    %54 = vector.shape_cast %53 : vector<1x8x32xf32> to vector<8x32xf32>
    %55 = vector.shape_cast %52 : vector<8x32xf32> to vector<1x8x32xf32>
    tpu.vector_store %arg11[%c0_37, %c0_38, %c0_39], %55 {strides = array<i32>} : memref<1x8x32xf32, #tpu.memory_space<vmem>>, vector<1x8x32xf32>,
    return
  }
  func.func @transform_0(%arg0: i32, %arg1: i32) -> (i32, i32, i32, i32) {
    %c0_i32 = arith.constant 0 : i32
    %c0_i32_0 = arith.constant 0 : i32
    %c0_i32_1 = arith.constant 0 : i32
    return %arg1, %arg0, %c0_i32, %c0_i32_0 : i32, i32, i32, i32
  }
  func.func @transform_1(%arg0: i32, %arg1: i32) -> (i32, i32) {
    %c0_i32 = arith.constant 0 : i32
    %c0_i32_0 = arith.constant 0 : i32
    %c0_i32_1 = arith.constant 0 : i32
    return %c0_i32, %c0_i32_0 : i32, i32
  }
  func.func @transform_2(%arg0: i32, %arg1: i32) -> (i32, i32, i32, i32) {
    %c0_i32 = arith.constant 0 : i32
    %c0_i32_0 = arith.constant 0 : i32
    %c0_i32_1 = arith.constant 0 : i32
    return %arg1, %arg0, %c0_i32, %c0_i32_0 : i32, i32, i32, i32
  }
  func.func @transform_3(%arg0: i32, %arg1: i32) -> (i32, i32, i32, i32) {
    %c0_i32 = arith.constant 0 : i32
    %c0_i32_0 = arith.constant 0 : i32
    %c0_i32_1 = arith.constant 0 : i32
    return %arg1, %arg0, %c0_i32, %c0_i32_0 : i32, i32, i32, i32
  }
  func.func @transform_4(%arg0: i32, %arg1: i32) -> (i32, i32, i32) {
    %c0_i32 = arith.constant 0 : i32
    %c0_i32_0 = arith.constant 0 : i32
    %c0_i32_1 = arith.constant 0 : i32
    return %arg1, %c0_i32, %c0_i32_0 : i32, i32, i32
  }
  func.func @transform_5(%arg0: i32, %arg1: i32) -> (i32, i32, i32) {
    %c0_i32 = arith.constant 0 : i32
    %c0_i32_0 = arith.constant 0 : i32
    %c0_i32_1 = arith.constant 0 : i32
    return %arg1, %c0_i32, %c0_i32_0 : i32, i32, i32
  }
  func.func @transform_6(%arg0: i32, %arg1: i32) -> (i32, i32, i32) {
    %c0_i32 = arith.constant 0 : i32
    %c0_i32_0 = arith.constant 0 : i32
    %c0_i32_1 = arith.constant 0 : i32
    return %arg1, %c0_i32, %c0_i32_0 : i32, i32, i32
  }
  func.func @transform_7(%arg0: i32, %arg1: i32) -> (i32, i32, i32) {
    %c0_i32 = arith.constant 0 : i32
    %c0_i32_0 = arith.constant 0 : i32
    %c0_i32_1 = arith.constant 0 : i32
    return %arg1, %c0_i32, %c0_i32_0 : i32, i32, i32
  }
  func.func @transform_8(%arg0: i32, %arg1: i32) -> (i32, i32, i32) {
    %c0_i32 = arith.constant 0 : i32
    %c0_i32_0 = arith.constant 0 : i32
    return %arg1, %arg0, %c0_i32 : i32, i32, i32
  }
  func.func @transform_9(%arg0: i32, %arg1: i32) -> (i32, i32, i32) {
    %c0_i32 = arith.constant 0 : i32
    %c0_i32_0 = arith.constant 0 : i32
    return %arg1, %arg0, %c0_i32 : i32, i32, i32
  }
}

</mosaic_0001>

<bundles_post_ra>
// kernel: tpu_custom_call.1
= control target key start
LH: loop header
LB: loop body
LE: loop exit
PB: predicated region body
PF: predicated region fallthrough
CT: control target
= control target key end

     0   :  { %s2766_s0 = inlined_call_operand.vmem [shape: f32[3,8,8,32], index: 0, kind: input, shape index: {}]   ;;  %s2767_s1 = inlined_call_operand.vmem [shape: f32[128,32], index: 1, kind: input, shape index: {}]   ;;  %s2768_s2 = inlined_call_operand.vmem [shape: f32[3,8,8,1], index: 2, kind: input, shape index: {}]   ;;  %s2769_s3 = inlined_call_operand.vmem [shape: f32[3,8,8,32], index: 3, kind: input, shape index: {}]   ;;  %s2770_s4 = inlined_call_operand.vmem [shape: f32[3,8,1], index: 4, kind: input, shape index: {}]   ;;  %s2771_s5 = inlined_call_operand.hbm [shape: f32[3,32,32], index: 5, kind: input, shape index: {}]   ;;  %s2772_s6 = inlined_call_operand.hbm [shape: f32[3,32,32], index: 6, kind: input, shape index: {}]   ;;  %s2773_s7 = inlined_call_operand.vmem [shape: f32[3,1,32], index: 7, kind: input, shape index: {}]   ;;  %s2774_s8 = inlined_call_operand.hbm [shape: f32[3,8,32], index: 8, kind: output, shape index: {0}]   ;;  %s2775_s9 = inlined_call_operand.hbm [shape: f32[3,8,32], index: 9, kind: output, shape index: {1}]  }
   0x1   :  { %2782 = sst [smem:[#allocation19_spill]] %s2771_s5 }
   0x2   :  { %2783 = sst [smem:[#allocation20_spill]] %s2774_s8 }
   0x3   :  { %15 = vsyncpa [#allocation3], 0 }
   0x4   :  { %17 = vsyncpa [#allocation3 + $0x1], 0 }
   0x5   :  { %18 = vsyncpa [#allocation6], 0 }
   0x6   :  { %20 = vsyncpa [#allocation6 + $0x1], 0 }
   0x7   :  { %21 = vsyncpa [#allocation4], 0 }
   0x8   :  { %23 = vsyncpa [#allocation4 + $0x1], 0 }
   0x9   :  { %24 = vsyncpa [#allocation9], 0 }
   0xa   :  { %26 = vsyncpa [#allocation9 + $0x1], 0  ;;  %s2334_s30 = smov 0   ;;  %s2336_s10 = smov 0  }
   0xb   :  { %s2338_s11 = smov 0   ;;  %s2340_s12 = smov 0  }
   0xc   :  { %s2342_s13 = smov 0   ;;  %s2344_s14 = smov 0  }
   0xd LB: > { %2784 = sst [smem:[#allocation14_spill]] %s2254_s30  ;;  %s1704_s15 = sadd.s32 4294967295, %s2274_s14   ;;  %s2274_s14 = sphi %s2344_s14, %s32_s14   ;;  %s2270_s13 = sphi %s2342_s13, %s2806_s13   ;;  %s2266_s12 = sphi %s2340_s12, %s2805_s12   ;;  %s2262_s11 = sphi %s2338_s11, %s2801_s11   ;;  %s2258_s10 = sphi %s2336_s10, %s2804_s10   ;;  %s2254_s30 = sphi %s2334_s30, %s2803_s30  }
   0xe   : > { %2785 = sst [smem:[#allocation15_spill]] %s2262_s11  ;;  %s1705_s16 = sadd.s32 4294967294, %s2274_s14  }
   0xf   : > { %s41_s17 = sadd.s32 1, %s2270_s13  ;;  %s182_s18 = sadd.s32 1, %s2262_s11 }
  0x10   : > { %p42_p0 = scmp.ge.s32.totalorder %s41_s17, 3  ;;  %p189_p1 = scmp.ne.s32.totalorder %s2262_s11, %s2258_s10 }
  0x11   : > { %p190_p2 = scmp.eq.s32.totalorder %s2274_s14, 0  ;;  %p195_p3 = scmp.ne.s32.totalorder %s2258_s10, %s2254_s30 }
  0x12   : > { %s2808_s17 = smov (%p42_p0, %s41_s17), 0  ;;  %p196_p5 = scmp.eq.s32.totalorder %s1704_s15, 0 }
  0x13   : > { %2786 = sst [smem:[#allocation16_spill]] %s2808_s17  ;;  %p2375_p4 = por %p190_p2, %p189_p1 }
  0x14   : > { %s179_s20 = ssub.s32 %s2270_s13, %s2808_s17  ;;  %p273_p6 = scmp.eq.s32.totalorder %s1704_s15, 2 }
  0x15   : > { %p180_p7 = scmp.eq.s32.totalorder %s179_s20, 0  ;;  %p2381_p8 = por %p196_p5, %p195_p3 }
  0x16   : > { %p2385_p9 = por %p273_p6, %p189_p1  ;;  %p279_p10 = scmp.eq.s32.totalorder %s1705_s16, 2 }
  0x17   : > { %s2390_s23 = scalar_select %p180_p7, %s2262_s11, %s182_s18  }
  0x18   : > { %p2392_p11 = por %p279_p10, %p195_p3  ;;  %p2000_p12 = scmp.lt.s32.totalorder %s2274_s14, 3 }
  0x19   : > { %2790 = sst [smem:[#allocation17_spill]] %s2390_s23  ;;  %s2398_s25 = sand.u32 1, %s2262_s11  }
  0x1a   : > { %s2791_s24 = scalar_select %p2392_p11, 1, 0 }
  0x1b   : > { %s2777_s26 = sshll.u32 %s2398_s25, 5  ;;  %s1773_s27 = sshll.u32 %s2270_s13, 9 }
  0x1c   : > { %2792 = sst [smem:[#allocation18_spill]] %s2791_s24  ;;  %s380_s16 = scalar_lea.vmem [#allocation2], %s2777_s26 }
  0x1d   : > { %s2793_s5 = sld [smem:[#allocation19_spill]]  ;;  %s387_s18 = sshll.u32 %s380_s16, 4  ;;  %s388_s18 = int_to_ptr.vmem [resolvable:$true] %s387_s18 }
  0x1e   : > { %p2411_p13 = pnand %p2000_p12, %p2375_p4  ;;  %p1714_p0 = scmp.ge.s32.totalorder %s2274_s14, 1 }
  0x1f   : > { %s377_s17 = scalar_lea.sflag [#allocation3], %s2398_s25  ;;  %s2117_s23 = scalar_lea.vmem %s388_s18, 512 }
  0x20   : > { %p2106_p1 = pneg %p2411_p13  ;;  %p2118_p2 = scmp.ne.s32.totalorder %s388_s18, %s2117_s23 }
  0x21   : > { %s2276_s28 = smov [#allocation2]  }
  0x22   : > { %p2120_p3 = pnand %p2118_p2, %p2106_p1  ;;  %s2122_s29 = sshll.u32 %s2276_s28, 4  ;;  %s2123_s29 = int_to_ptr.vmem [resolvable:$false] %s2122_s29 }
  0x23   : > { %s386_s15 = scalar_lea.hbm %s2793_s5, %s1773_s27  ;;  %s2124_s19 = scalar_lea.vmem %s2123_s29, 1024 }
  0x24   : > { %p2121_p5 = pneg %p2120_p3  ;;  %p2125_p4 = scmp.lt.s32.totalorder %s388_s18, %s2123_s29 }
  0x25   : > { %p2126_p6 = scmp.lt.s32.totalorder %s2124_s19, %s2117_s23 }
  0x27   : > { %p2127_p7 = por %p2126_p6, %p2125_p4 }
  0x29   : > { %p2128_p10 = pnand %p2127_p7, %p2121_p5 }
  0x2b   : > { %2131 = shalt.err (!%p2128_p10)
}
  0x2c   : > { %s2277_s16 = smov 128   ;;  %s2278_s26 = smov 8  }
  0x2d   : > { %1989 = dma.hbm_to_vmem [thread:$0]  (!%p2411_p13), %s386_s15, 512, %s388_s18, %s377_s17, %s2277_s16, %s2277_s16, %s2278_s26  }
  0x2e   : > { %p422_p12 = scmp.lt.s32.totalorder %s2274_s14, 4  ;;  %s407_s23 = scalar_lea.hbm %s2772_s6, %s1773_s27 }
  0x2f   : > { %s2796_s19 = sshll.u32 %s2398_s25, 5  ;;  %s398_s30 = scalar_lea.sflag [#allocation6], %s2398_s25 }
  0x30   : > { %p2432_p2 = pnand %p1714_p0, %p422_p12  ;;  %s401_s11 = scalar_lea.vmem [#allocation5], %s2796_s19 }
  0x31   : > { %s408_s24 = sshll.u32 %s401_s11, 4  ;;  %s2279_s17 = smov [#allocation5]   ;;  %s409_s24 = int_to_ptr.vmem [resolvable:$true] %s408_s24 }
  0x32   : > { %s2145_s8 = scalar_lea.vmem %s409_s24, 512  ;;  %s2150_s15 = sshll.u32 %s2279_s17, 4  ;;  %s2151_s15 = int_to_ptr.vmem [resolvable:$false] %s2150_s15 }
  0x33   : > { %p2146_p3 = scmp.ne.s32.totalorder %s409_s24, %s2145_s8  ;;  %s2152_s5 = scalar_lea.vmem %s2151_s15, 1024 }
  0x34   : > { %p2153_p6 = scmp.lt.s32.totalorder %s409_s24, %s2151_s15  ;;  %p2154_p0 = scmp.lt.s32.totalorder %s2152_s5, %s2145_s8 }
  0x35   : > { %p2148_p5 = pnand %p2146_p3, %p2106_p1 }
  0x36   : > { %p2155_p7 = por %p2154_p0, %p2153_p6 }
  0x37   : > { %p2149_p4 = pneg %p2148_p5 }
  0x39   : > { %p2156_p10 = pnand %p2155_p7, %p2149_p4 }
  0x3b   : > { %2159 = shalt.err (!%p2156_p10)
}
  0x3c   : > { %1992 = dma.hbm_to_vmem [thread:$0]  (!%p2411_p13), %s407_s23, 512, %s409_s24, %s398_s30, %s2277_s16, %s2277_s16, %s2278_s26  }
  0x3d   : > { %426 = sbr.rel (%p2432_p2) target bundleno = 1111 (0x457), region = 52  ;;  %s2447_s11 = sand.u32 (!%p2432_p2), 1, %s2258_s10  }
  0x3e   : > { %s1715_s25 = sshll.u32 (!%p2432_p2), %s2447_s11, 5  ;;  %s429_s27 = scalar_lea.sflag (!%p2432_p2), [#allocation3], %s2447_s11 }
  0x3f   : > { %s2451_s18 = scalar_lea.vmem (!%p2432_p2), [#allocation2], %s1715_s25 }
  0x42   : > { %2237 = dma.done.wait (%p2381_p8), %s429_s27, 512  }
  0x43   : > { %2239 = vsyncadd (%p2381_p8), %s429_s27, 4294966784  ;;  %s438_s8 = scalar_lea.sflag [#allocation6], %s2447_s11  ;;  %s2458_s30 = scalar_lea.vmem [#allocation5], %s1715_s25 }
  0x44   : > { %2241 = dma.done.wait (%p2381_p8), %s438_s8, 512  }
  0x45   : > { %2243 = vsyncadd (%p2381_p8), %s438_s8, 4294966784  ;;  %p521_p13 = scmp.lt.s32.totalorder %s2266_s12, 2  ;;  %vm585_vm0 = vcmask 261120   ;;  %v580_v0 = vld [vmem:[%s2767_s1 + $0x78] sm:$0xff]  ;;  %v579_v1 = vld [vmem:[%s2767_s1 + $0x70] sm:$0xff]  ;;  %vm1371_vm1 = vcmask 1041409   ;;  %v581_v63 = vlaneseq }
  0x46   : > { %1850 = vmatprep.subr.msk.mxu0 %vm585_vm0, %v580_v0  ;;  %1894 = vmatprep.subr.mxu1 %v580_v0  ;;  %v578_v2 = vld [vmem:[%s2767_s1 + $0x68] sm:$0xff]  ;;  %v577_v9 = vld [vmem:[%s2767_s1 + $0x60] sm:$0xff]  ;;  %v576_v18 = vld [vmem:[%s2767_s1 + $0x58] sm:$0xff]  ;;  %vm1373_vm2 = vcmask 1042434   ;;  %vm1375_vm3 = vcmask 1043459   ;;  %vm1377_vm4 = vcmask 1044484  }
  0x47   : > { %s2466_s24 = scalar_select %p521_p13, %s2266_s12, 2  ;;  %1851 = vmatpush3.xpose.msk.msra.mxu0 %vm585_vm0, %v580_v0  ;;  %1895 = vmatpush3.msra.mxu1 %v580_v0  ;;  %v575_v24 = vld [vmem:[%s2767_s1 + $0x50] sm:$0xff]  ;;  %v574_v33 = vld [vmem:[%s2767_s1 + $0x48] sm:$0xff]  ;;  %v573_v39 = vld [vmem:[%s2767_s1 + $0x40] sm:$0xff]  ;;  %v582_v0 = vand.u32 127, %v581_v63  ;;  %vm1379_vm6 = vcmask 1045509  }
  0x48   : > { %1852 = vmatprep.subr.msk.mxu0 %vm585_vm0, %v579_v1  ;;  %1896 = vmatprep.subr.mxu1 %v579_v1  ;;  %v572_v47 = vld [vmem:[%s2767_s1 + $0x38] sm:$0xff]  ;;  %v571_v51 = vld [vmem:[%s2767_s1 + $0x30] sm:$0xff]  ;;  %v570_v54 = vld [vmem:[%s2767_s1 + $0x28] sm:$0xff]  ;;  %vm1381_vm7 = vcmask 1046534   ;;  %vm1383_vm8 = vcmask 1047559   ;;  %s1466_s27 = scalar_lea.sflag [#allocation9], %s2447_s11 }
  0x49   : > { %s2469_s26 = sshll.u32 %s2466_s24, 6  ;;  %1897 = vmatpush3.msra.mxu1 %v579_v1  ;;  %v569_v55 = vld [vmem:[%s2767_s1 + $0x20] sm:$0xff]  ;;  %v568_v56 = vld [vmem:[%s2767_s1 + $0x18] sm:$0xff]  ;;  %v567_v57 = vld [vmem:[%s2767_s1 + $0x10] sm:$0xff]  ;;  %vm583_vm5 = vcmp.lt.s32.totalorder %v582_v0, 24  ;;  %s1725_s20 = sshll.u32 %s2466_s24, 3 }
  0x4a   : > { %s2483_s19 = scalar_lea.vmem %s2766_s0, %s2469_s26  ;;  %1898 = vmatprep.subr.mxu1 %v578_v2  ;;  %v566_v58 = vld [vmem:[%s2767_s1 + $0x8] sm:$0xff]  ;;  %v565_v59 = vld [vmem:[%s2767_s1] sm:$0xff]  ;;  %s538_s8 = scalar_lea.vmem %s2768_s2, %s2469_s26  ;;  %v1011_v0 = vld [vmem:[%s2458_s30 + $0x18] sm:$0xff] }
  0x4b   : > { %v557_v3 = vld [vmem:[%s2483_s19] sm:$0xff]  ;;  %v2491_v4 = vld [vmem:[%s2483_s19 + $0x8] sm:$0xff]  ;;  %1853 = vmatpush3.xpose.msk.msra.mxu0 %vm585_vm0, %v579_v1  ;;  %v2499_v7 = vld [vmem:[%s2483_s19 + $0x10] sm:$0xff]  ;;  %1899 = vmatpush3.msra.mxu1 %v578_v2  ;;  %s553_s23 = scalar_lea.vmem %s2770_s4, %s1725_s20  ;;  %s548_s29 = scalar_lea.vmem %s2769_s3, %s2469_s26 }
  0x4c   : > { %1882 = vmatprep.mubr.msk.f32.mxu0 %vm585_vm0, %v557_v3  ;;  %v1387_v5 = vsel %vm585_vm0, %v557_v3, 0.0  ;;  %v1394_v6 = vsel %vm585_vm0, %v2491_v4, 0.0  ;;  %v2502_v8 = vld [vmem:[%s2483_s19 + $0x18] sm:$0xff]  ;;  %1854 = vmatprep.subr.msk.mxu0 %vm585_vm0, %v578_v2  ;;  %v1401_v12 = vsel %vm585_vm0, %v2499_v7, 0.0  ;;  %v2513_v14 = vld [vmem:[%s2483_s19 + $0x20] sm:$0xff]  ;;  %v2595_v60 = vld [vmem:[%s2483_s19 + $0x28] sm:$0xff] }
  0x4d   : > { %v1388_v10 = vrot.slane %v1387_v5, 4  ;;  %v1395_v11 = vrot.slane %v1394_v6, 4  ;;  %v1408_v13 = vsel %vm585_vm0, %v2502_v8, 0.0  ;;  %v1402_v15 = vrot.slane %v1401_v12, 4  ;;  %1900 = vmatprep.subr.mxu1 %v577_v9  ;;  %v2598_v61 = vld [vmem:[%s2483_s19 + $0x30] sm:$0xff]  ;;  %v2605_v62 = vld [vmem:[%s2483_s19 + $0x38] sm:$0xff] }
  0x4e   : > { %v1409_v16 = vrot.slane %v1408_v13, 4  ;;  %v1415_v17 = vsel %vm585_vm0, %v2513_v14, 0.0  ;;  %1901 = vmatpush3.msra.mxu1 %v577_v9  ;;  %v842_v63 = vld [vmem:[%s538_s8 + $0x38] sm:$0xff]  ;;  %s1769_s26 = sshll.u32 %s2266_s12, 7  ;;  %s2282_s20 = smov [#allocation8]  }
  0x4f   : > { %v1389_v19 = vadd.f32 %v1388_v10, %v1387_v5  ;;  %v1396_v20 = vadd.f32 %v1395_v11, %v1394_v6  ;;  %v1416_v21 = vrot.slane %v1415_v17, 4  ;;  %1855 = vmatpush3.xpose.msk.msra.mxu0 %vm585_vm0, %v578_v2  ;;  %v1403_v22 = vadd.f32 %v1402_v15, %v1401_v12  ;;  %1902 = vmatprep.subr.mxu1 %v576_v18  ;;  %s1492_s25 = scalar_lea.hbm %s2775_s9, %s1769_s26  ;;  %s2164_s16 = sshll.u32 %s2282_s20, 4  ;;  %s2165_s16 = int_to_ptr.vmem [resolvable:$false] %s2164_s16 }
  0x50   : > { %v1410_v23 = vadd.f32 %v1409_v16, %v1408_v13  ;;  %1856 = vmatprep.subr.msk.mxu0 %vm585_vm0, %v577_v9  ;;  %1903 = vmatpush3.msra.mxu1 %v576_v18  ;;  %v2280_v2 = vmov -1e+09   ;;  %s2166_s28 = scalar_lea.vmem %s2165_s16, 256 }
  0x51   : > { %v1390_v25 = vrot.slane %v1389_v19, 2  ;;  %v1397_v26 = vrot.slane %v1396_v20, 2  ;;  %v1417_v27 = vadd.f32 %v1416_v21, %v1415_v17  ;;  %v1404_v28 = vrot.slane %v1403_v22, 2  ;;  %1904 = vmatprep.subr.mxu1 %v575_v24 }
  0x52   : > { %v1411_v29 = vrot.slane %v1410_v23, 2  ;;  %1905 = vmatpush3.msra.mxu1 %v575_v24  ;;  %v584_v3 = vsel %vm583_vm5, 0.0, %v2280_v2 }
  0x53   : > { %v1391_v30 = vadd.f32 %v1390_v25, %v1389_v19  ;;  %v1398_v31 = vadd.f32 %v1397_v26, %v1396_v20  ;;  %v1418_v32 = vrot.slane %v1417_v27, 2  ;;  %1857 = vmatpush3.xpose.msk.msra.mxu0 %vm585_vm0, %v577_v9  ;;  %v1405_v34 = vadd.f32 %v1404_v28, %v1403_v22  ;;  %1906 = vmatprep.subr.mxu1 %v574_v33 }
  0x54   : > { %v1412_v35 = vadd.f32 %v1411_v29, %v1410_v23  ;;  %1858 = vmatprep.subr.msk.mxu0 %vm585_vm0, %v576_v18  ;;  %1907 = vmatpush3.msra.mxu1 %v574_v33  ;;  %v2281_v19 = vmov 0  }
  0x55   : > { %v1392_v36 = vrot.slane %v1391_v30, 1  ;;  %v1399_v37 = vrot.slane %v1398_v31, 1  ;;  %v1419_v38 = vadd.f32 %v1418_v32, %v1417_v27  ;;  %v1406_v40 = vrot.slane %v1405_v34, 1  ;;  %1908 = vmatprep.subr.mxu1 %v573_v39  ;;  %2055 = vset.pattern.permute.xlu1 %v2281_v19 }
  0x56   : > { %v1413_v41 = vrot.slane %v1412_v35, 1  ;;  %1909 = vmatpush3.msra.mxu1 %v573_v39  ;;  %2054 = vset.pattern.permute.xlu0 %v2281_v19 }
  0x57   : > { %v1393_v42 = vadd.f32 %v1392_v36, %v1391_v30  ;;  %v1400_v43 = vadd.f32 %v1399_v37, %v1398_v31  ;;  %v1420_v44 = vrot.slane %v1419_v38, 1  ;;  %1859 = vmatpush3.xpose.msk.msra.mxu0 %vm585_vm0, %v576_v18  ;;  %v1407_v45 = vadd.f32 %v1406_v40, %v1405_v34  ;;  %1910 = vmatprep.subr.mxu1 %v572_v47 }
  0x58   : > { %v1414_v46 = vadd.f32 %v1413_v41, %v1412_v35  ;;  %1860 = vmatprep.subr.msk.mxu0 %vm585_vm0, %v575_v24  ;;  %1911 = vmatpush3.msra.mxu1 %v572_v47 }
  0x59   : > { %v1451_v48 = vsel %vm1371_vm1, %v1400_v43, %v1393_v42  ;;  %v1421_v49 = vadd.f32 %v1420_v44, %v1419_v38  ;;  %1912 = vmatprep.subr.mxu1 %v571_v51 }
  0x5a   : > { %v1452_v50 = vsel %vm1373_vm2, %v1407_v45, %v1451_v48  ;;  %1913 = vmatpush3.msra.mxu1 %v571_v51 }
  0x5b   : > { %v1453_v52 = vsel %vm1375_vm3, %v1414_v46, %v1452_v50  ;;  %1861 = vmatpush3.xpose.msk.msra.mxu0 %vm585_vm0, %v575_v24  ;;  %1914 = vmatprep.subr.mxu1 %v570_v54 }
  0x5c   : > { %v2546_v53 = vsel %vm1377_vm4, %v1421_v49, %v1453_v52  ;;  %1862 = vmatprep.subr.msk.mxu0 %vm585_vm0, %v574_v33  ;;  %1915 = vmatpush3.msra.mxu1 %v570_v54  ;;  %v836_v52 = vld [vmem:[%s538_s8 + $0x8] sm:$0xff] }
  0x5d   : > { %1916 = vmatprep.subr.mxu1 %v569_v55 }
  0x5e   : > { %1917 = vmatpush3.msra.mxu1 %v569_v55 }
  0x5f   : > { %1863 = vmatpush3.xpose.msk.msra.mxu0 %vm585_vm0, %v574_v33  ;;  %1918 = vmatprep.subr.mxu1 %v568_v56 }
  0x60   : > { %1864 = vmatprep.subr.msk.mxu0 %vm585_vm0, %v573_v39  ;;  %1919 = vmatpush3.msra.mxu1 %v568_v56 }
  0x61   : > { %1920 = vmatprep.subr.mxu1 %v567_v57 }
  0x62   : > { %1921 = vmatpush3.msra.mxu1 %v567_v57 }
  0x63   : > { %1865 = vmatpush3.xpose.msk.msra.mxu0 %vm585_vm0, %v573_v39  ;;  %1922 = vmatprep.subr.mxu1 %v566_v58 }
  0x64   : > { %1866 = vmatprep.subr.msk.mxu0 %vm585_vm0, %v572_v47  ;;  %1923 = vmatpush3.msra.mxu1 %v566_v58 }
  0x65   : > { %1924 = vmatprep.subr.mxu1 %v565_v59 }
  0x66   : > { %1925 = vmatpush3.msra.mxu1 %v565_v59 }
  0x67   : > { %1867 = vmatpush3.xpose.msk.msra.mxu0 %vm585_vm0, %v572_v47  ;;  %1938 = vmatprep.subr.mxu1 %v1011_v0 }
  0x68   : > { %1868 = vmatprep.subr.msk.mxu0 %vm585_vm0, %v571_v51 }
  0x6b   : > { %1869 = vmatpush3.xpose.msk.msra.mxu0 %vm585_vm0, %v571_v51 }
  0x6c   : > { %1870 = vmatprep.subr.msk.mxu0 %vm585_vm0, %v570_v54 }
  0x6f   : > { %1871 = vmatpush3.xpose.msk.msra.mxu0 %vm585_vm0, %v570_v54  ;;  %v835_v54 = vld [vmem:[%s538_s8] sm:$0xff] }
  0x70   : > { %1872 = vmatprep.subr.msk.mxu0 %vm585_vm0, %v569_v55 }
  0x73   : > { %1873 = vmatpush3.xpose.msk.msra.mxu0 %vm585_vm0, %v569_v55  ;;  %v837_v55 = vld [vmem:[%s538_s8 + $0x10] sm:$0xff] }
  0x74   : > { %1874 = vmatprep.subr.msk.mxu0 %vm585_vm0, %v568_v56 }
  0x77   : > { %1875 = vmatpush3.xpose.msk.msra.mxu0 %vm585_vm0, %v568_v56  ;;  %v838_v56 = vld [vmem:[%s538_s8 + $0x18] sm:$0xff] }
  0x78   : > { %1876 = vmatprep.subr.msk.mxu0 %vm585_vm0, %v567_v57 }
  0x7b   : > { %1877 = vmatpush3.xpose.msk.msra.mxu0 %vm585_vm0, %v567_v57  ;;  %v839_v57 = vld [vmem:[%s538_s8 + $0x20] sm:$0xff] }
  0x7c   : > { %1878 = vmatprep.subr.msk.mxu0 %vm585_vm0, %v566_v58 }
  0x7f   : > { %1879 = vmatpush3.xpose.msk.msra.mxu0 %vm585_vm0, %v566_v58  ;;  %v840_v58 = vld [vmem:[%s538_s8 + $0x28] sm:$0xff] }
  0x80   : > { %1880 = vmatprep.subr.msk.mxu0 %vm585_vm0, %v565_v59 }
  0x83   : > { %1881 = vmatpush3.xpose.msk.msra.mxu0 %vm585_vm0, %v565_v59  ;;  %v841_v59 = vld [vmem:[%s538_s8 + $0x30] sm:$0xff] }
  0x86   : > { %1883 = vmatmul.mubr.msk.f32.vlgmr.msra.gmra.mxu0 %vm585_vm0, %v2491_v4 }
  0x87   : > { %1885 = vmatprep.mubr.msk.f32.mxu0 %vm585_vm0, %v2499_v7 }
  0x8a   : > { %1886 = vmatmul.mubr.msk.f32.gmra.mxu0 %vm585_vm0, %v2502_v8 }
  0x8b   : > { %1888 = vmatprep.mubr.msk.f32.mxu0 %vm585_vm0, %v2513_v14 }
  0x8e   : > { %1889 = vmatmul.mubr.msk.f32.gmra.mxu0 %vm585_vm0, %v2595_v60 }
  0x8f   : > { %1891 = vmatprep.mubr.msk.f32.mxu0 %vm585_vm0, %v2598_v61 }
  0x92   : > { %1892 = vmatmul.mubr.msk.f32.gmra.mxu0 %vm585_vm0, %v2605_v62 }
 0x146   : > { %v1884_v1 = vpop.f32.mrf.mxu0 }
 0x147   : > { %v730_v8 = vadd.f32 %v1884_v1, %v584_v3  ;;  %v1293_v1 = vld [vmem:[%s553_s23] sm:$0xff] }
 0x148   : > { %v724_v4 = vpop.f32.mrf.mxu0 }
 0x149   : > { %v725_v5 = vadd.f32 %v724_v4, %v584_v3 }
 0x14a   : > { %v1887_v6 = vpop.f32.mrf.mxu0 }
 0x14b   : > { %763 = vmax.xlane.f32.xlu0 %v725_v5  ;;  %v740_v12 = vadd.f32 %v1887_v6, %v584_v3 }
 0x14c   : > { %v734_v7 = vpop.f32.mrf.mxu0 }
 0x14d   : > { %v735_v9 = vadd.f32 %v734_v7, %v584_v3 }
 0x14e   : > { %v1890_v10 = vpop.f32.mrf.mxu0 }
 0x14f   : > { %767 = vmax.xlane.f32.xlu1 %v735_v9  ;;  %765 = vmax.xlane.f32.xlu0 %v730_v8  ;;  %v750_v15 = vadd.f32 %v1890_v10, %v584_v3 }
 0x150   : > { %v744_v11 = vpop.f32.mrf.mxu0 }
 0x151   : > { %v745_v13 = vadd.f32 %v744_v11, %v584_v3 }
 0x152   : > { %v1893_v14 = vpop.f32.mrf.mxu0 }
 0x153   : > { %769 = vmax.xlane.f32.xlu1 %v740_v12  ;;  %771 = vmax.xlane.f32.xlu0 %v745_v13  ;;  %v760_v18 = vadd.f32 %v1893_v14, %v584_v3 }
 0x154   : > { %v754_v16 = vpop.f32.mrf.mxu0 }
 0x155   : > { %v755_v17 = vadd.f32 %v754_v16, %v584_v3 }
 0x157   : > { %773 = vmax.xlane.f32.xlu1 %v750_v15  ;;  %775 = vmax.xlane.f32.xlu0 %v755_v17 }
 0x15b   : > { %777 = vmax.xlane.f32.xlu1 %v760_v18 }
 0x1d4   : > { %v764_v20 = vpop.xlane.xlu0 %763 }
 0x1d5   : > { %v779_v21 = vsub.f32 %v725_v5, %v764_v20  ;;  %v1010_v20 = vld [vmem:[%s2458_s30 + $0x10] sm:$0xff] }
 0x1d7   : > { %v787_v22 = vmul.f32 1.442695, %v779_v21 }
 0x1d8   : > { %v768_v23 = vpop.xlane.xlu1 %767  ;;  %v766_v24 = vpop.xlane.xlu0 %765 }
 0x1d9   : > { %2056 = vpow2.f32 %v787_v22  ;;  %v781_v25 = vsub.f32 %v735_v9, %v768_v23  ;;  %v780_v26 = vsub.f32 %v730_v8, %v766_v24  ;;  %v1009_v24 = vld [vmem:[%s2458_s30 + $0x8] sm:$0xff] }
 0x1db   : > { %v791_v27 = vmul.f32 1.442695, %v781_v25  ;;  %v789_v28 = vmul.f32 1.442695, %v780_v26  ;;  %v1008_v26 = vld [vmem:[%s2458_s30] sm:$0xff] }
 0x1dc   : > { %v770_v29 = vpop.xlane.xlu1 %769  ;;  %v772_v30 = vpop.xlane.xlu0 %771 }
 0x1dd   : > { %2058 = vpow2.f32 %v791_v27  ;;  %v782_v31 = vsub.f32 %v740_v12, %v770_v29  ;;  %v783_v32 = vsub.f32 %v745_v13, %v772_v30  ;;  %v1007_v30 = vld [vmem:[%s2451_s18 + $0x18] sm:$0xff] }
 0x1de   : > { %2060 = vpow2.f32 %v789_v28 }
 0x1df   : > { %v793_v33 = vmul.f32 1.442695, %v782_v31  ;;  %v795_v34 = vmul.f32 1.442695, %v783_v32 }
 0x1e0   : > { %v774_v35 = vpop.xlane.xlu1 %773  ;;  %v776_v36 = vpop.xlane.xlu0 %775 }
 0x1e1   : > { %2062 = vpow2.f32 %v793_v33  ;;  %v784_v37 = vsub.f32 %v750_v15, %v774_v35  ;;  %v785_v38 = vsub.f32 %v755_v17, %v776_v36 }
 0x1e2   : > { %2064 = vpow2.f32 %v795_v34 }
 0x1e3   : > { %v797_v39 = vmul.f32 1.442695, %v784_v37  ;;  %v799_v40 = vmul.f32 1.442695, %v785_v38 }
 0x1e4   : > { %v778_v41 = vpop.xlane.xlu1 %777 }
 0x1e5   : > { %2066 = vpow2.f32 %v797_v39  ;;  %v786_v42 = vsub.f32 %v760_v18, %v778_v41 }
 0x1e6   : > { %v2057_v43 = vpop.eup %2056  ;;  %2068 = vpow2.f32 %v799_v40 }
 0x1e7   : > { %v801_v44 = vmul.f32 1.442695, %v786_v42  ;;  %803 = vadd.xlane.f32.xlu0 %v2057_v43 }
 0x1e9   : > { %2070 = vpow2.f32 %v801_v44 }
 0x1ea   : > { %v2059_v45 = vpop.eup %2058 }
 0x1eb   : > { %v2061_v46 = vpop.eup %2060  ;;  %807 = vadd.xlane.f32.xlu0 %v2059_v45 }
 0x1ec   : > { %805 = vadd.xlane.f32.xlu1 %v2061_v46 }
 0x1ee   : > { %v2609_v47 = vpop.eup %2062 }
 0x1ef   : > { %v2611_v48 = vpop.eup %2064 }
 0x1f0   : > { %809 = vadd.xlane.f32.xlu1 %v2609_v47  ;;  %811 = vadd.xlane.f32.xlu0 %v2611_v48 }
 0x1f2   : > { %v2615_v49 = vpop.eup %2066 }
 0x1f3   : > { %v2617_v50 = vpop.eup %2068 }
 0x1f4   : > { %813 = vadd.xlane.f32.xlu1 %v2615_v49  ;;  %815 = vadd.xlane.f32.xlu0 %v2617_v50 }
 0x1f6   : > { %v2621_v51 = vpop.eup %2070 }
 0x1f8   : > { %817 = vadd.xlane.f32.xlu1 %v2621_v51 }
 0x209   : > { %850 = vperm.xlu1 %2055, %v836_v52   ;;  %v1000_v52 = vld [vmem:[%s548_s29 + $0x20] sm:$0xff] }
 0x20a   : > { %845 = vperm.xlu0 %2054, %v835_v54   ;;  %v1002_v54 = vld [vmem:[%s548_s29 + $0x30] sm:$0xff] }
 0x20d   : > { %855 = vperm.xlu1 %2055, %v837_v55   ;;  %v1003_v55 = vld [vmem:[%s548_s29 + $0x38] sm:$0xff] }
 0x211   : > { %860 = vperm.xlu1 %2055, %v838_v56   ;;  %v1005_v56 = vld [vmem:[%s2451_s18 + $0x8] sm:$0xff] }
 0x215   : > { %865 = vperm.xlu1 %2055, %v839_v57   ;;  %v1004_v57 = vld [vmem:[%s2451_s18] sm:$0xff] }
 0x219   : > { %870 = vperm.xlu1 %2055, %v840_v58  }
 0x21d   : > { %875 = vperm.xlu1 %2055, %v841_v59  }
 0x221   : > { %880 = vperm.xlu1 %2055, %v842_v63  }
 0x225   : > { %1296 = vperm.xlu1 %2055, %v1293_v1  }
 0x270   : > { %v804_v2 = vpop.xlane.xlu0 %803 }
 0x271   : > { %2072 = vrcp.f32 %v804_v2 }
 0x274   : > { %v808_v4 = vpop.xlane.xlu0 %807 }
 0x275   : > { %v806_v3 = vpop.xlane.xlu1 %805 }
 0x276   : > { %2074 = vrcp.f32 %v806_v3 }
 0x277   : > { %2076 = vrcp.f32 %v808_v4 }
 0x279   : > { %v810_v5 = vpop.xlane.xlu1 %809  ;;  %v812_v6 = vpop.xlane.xlu0 %811 }
 0x27a   : > { %2078 = vrcp.f32 %v810_v5  ;;  %v1422_v5 = vsel %vm585_vm0, %v2595_v60, 0.0 }
 0x27b   : > { %2080 = vrcp.f32 %v812_v6  ;;  %v1423_v6 = vrot.slane %v1422_v5, 4 }
 0x27d   : > { %v814_v7 = vpop.xlane.xlu1 %813  ;;  %v816_v9 = vpop.xlane.xlu0 %815 }
 0x27e   : > { %v2073_v8 = vpop.eup %2072  ;;  %2082 = vrcp.f32 %v814_v7  ;;  %v1429_v7 = vsel %vm585_vm0, %v2598_v61, 0.0 }
 0x27f   : > { %v827_v13 = vmul.f32 %v2073_v8, %v2057_v43  ;;  %2084 = vrcp.f32 %v816_v9  ;;  %v1436_v8 = vsel %vm585_vm0, %v2605_v62, 0.0  ;;  %v1430_v9 = vrot.slane %v1429_v7, 4 }
 0x281   : > { %v818_v10 = vpop.xlane.xlu1 %817 }
 0x282   : > { %2086 = vrcp.f32 %v818_v10  ;;  %v1424_v10 = vadd.f32 %v1423_v6, %v1422_v5 }
 0x283   : > { %v2075_v11 = vpop.eup %2074 }
 0x284   : > { %v828_v12 = vmul.f32 %v2075_v11, %v2061_v46  ;;  %v2077_v14 = vpop.eup %2076  ;;  %v996_v46 = vld [vmem:[%s548_s29] sm:$0xff]  ;;  %v1437_v11 = vrot.slane %v1436_v8, 4 }
 0x285   : > { %v851_v15 = vpop.permute.xlu1 %850  ;;  %v846_v16 = vpop.permute.xlu0 %845  ;;  %v829_v19 = vmul.f32 %v2077_v14, %v2059_v45 }
 0x286   : > { %v884_v17 = vmul.f32 %v851_v15, %v828_v12  ;;  %v883_v18 = vmul.f32 %v846_v16, %v827_v13  ;;  %v1431_v12 = vadd.f32 %v1430_v9, %v1429_v7  ;;  %v1425_v13 = vrot.slane %v1424_v10, 2 }
 0x287   : > { %v2079_v21 = vpop.eup %2078  ;;  %v1438_v14 = vadd.f32 %v1437_v11, %v1436_v8 }
 0x288   : > { %1926 = vmatprep.mubr.f32.mxu1 %v883_v18  ;;  %v830_v25 = vmul.f32 %v2079_v21, %v2609_v47  ;;  %v2081_v27 = vpop.eup %2080  ;;  %v997_v47 = vld [vmem:[%s548_s29 + $0x8] sm:$0xff]  ;;  %v1432_v15 = vrot.slane %v1431_v12, 2  ;;  %v1426_v16 = vadd.f32 %v1425_v13, %v1424_v10 }
 0x289   : > { %v856_v22 = vpop.permute.xlu1 %855  ;;  %1927 = vmatmul.mubr.f32.vlgmr.msra.gmra.mxu1 %v884_v17  ;;  %v831_v31 = vmul.f32 %v2081_v27, %v2611_v48  ;;  %v998_v48 = vld [vmem:[%s548_s29 + $0x10] sm:$0xff]  ;;  %v1439_v17 = vrot.slane %v1438_v14, 2 }
 0x28a   : > { %v885_v23 = vmul.f32 %v856_v22, %v829_v19  ;;  %1939 = vmatpush3.msra.mxu1 %v1011_v0  ;;  %v1433_v18 = vadd.f32 %v1432_v15, %v1431_v12  ;;  %v1427_v60 = vrot.slane %v1426_v16, 1 }
 0x28b   : > { %1940 = vmatprep.subr.mxu1 %v1010_v20  ;;  %v2083_v32 = vpop.eup %2082  ;;  %v1440_v19 = vadd.f32 %v1439_v17, %v1438_v14 }
 0x28c   : > { %1929 = vmatprep.mubr.f32.mxu1 %v885_v23  ;;  %1941 = vmatpush3.msra.mxu1 %v1010_v20  ;;  %v832_v35 = vmul.f32 %v2083_v32, %v2615_v49  ;;  %v2085_v36 = vpop.eup %2084  ;;  %v1006_v49 = vld [vmem:[%s2451_s18 + $0x10] sm:$0xff]  ;;  %v1434_v61 = vrot.slane %v1433_v18, 1  ;;  %v1428_v20 = vadd.f32 %v1427_v60, %v1426_v16  ;;  %s1717_s18 = sshll.u32 %s2447_s11, 3 }
 0x28d   : > { %v861_v28 = vpop.permute.xlu1 %860  ;;  %1942 = vmatprep.subr.mxu1 %v1009_v24  ;;  %v833_v39 = vmul.f32 %v2085_v36, %v2617_v50  ;;  %v999_v50 = vld [vmem:[%s548_s29 + $0x18] sm:$0xff]  ;;  %v1441_v21 = vrot.slane %v1440_v19, 1  ;;  %s519_s17 = scalar_lea.vmem [#allocation8], %s1717_s18 }
 0x28e   : > { %v886_v29 = vmul.f32 %v861_v28, %v830_v25  ;;  %1943 = vmatpush3.msra.mxu1 %v1009_v24  ;;  %v1435_v62 = vadd.f32 %v1434_v61, %v1433_v18  ;;  %v1455_v22 = vsel %vm1379_vm6, %v1428_v20, %v2546_v53  ;;  %s1494_s19 = sshll.u32 %s519_s17, 4  ;;  %s1495_s19 = int_to_ptr.vmem [resolvable:$true] %s1494_s19 }
 0x28f   : > { %1944 = vmatprep.subr.mxu1 %v1008_v26  ;;  %v2087_v40 = vpop.eup %2086  ;;  %v1442_v23 = vadd.f32 %v1441_v21, %v1440_v19  ;;  %s2160_s8 = scalar_lea.vmem %s1495_s19, 128  ;;  %p2167_p2 = scmp.lt.s32.totalorder %s1495_s19, %s2165_s16 }
 0x290   : > { %1930 = vmatmul.mubr.f32.gmra.mxu1 %v886_v29  ;;  %v834_v43 = vmul.f32 %v2087_v40, %v2621_v51  ;;  %v1001_v51 = vld [vmem:[%s548_s29 + $0x28] sm:$0xff]  ;;  %v1456_v24 = vsel %vm1381_vm7, %v1435_v62, %v1455_v22  ;;  %p2161_p8 = scmp.ne.s32.totalorder %s1495_s19, %s2160_s8  ;;  %p2168_p3 = scmp.lt.s32.totalorder %s2166_s28, %s2160_s8 }
 0x291   : > { %v866_v33 = vpop.permute.xlu1 %865  ;;  %1945 = vmatpush3.msra.mxu1 %v1008_v26  ;;  %v1457_v25 = vsel %vm1383_vm8, %v1442_v23, %v1456_v24 }
 0x292   : > { %v887_v34 = vmul.f32 %v866_v33, %v831_v31  ;;  %1958 = vmatprep.subr.mxu1 %v1007_v30  ;;  %1459 = vst.msk [vmem:[%s519_s17] sm:$0xff] %vm585_vm0, %v1457_v25  ;;  %p2162_p1 = pnand %p2161_p8, %p2385_p9  ;;  %p2169_p5 = por %p2168_p3, %p2167_p2 }
 0x294   : > { %1932 = vmatprep.mubr.f32.mxu1 %v887_v34  ;;  %p2163_p12 = pneg %p2162_p1 }
 0x295   : > { %v871_v37 = vpop.permute.xlu1 %870 }
 0x296   : > { %v888_v38 = vmul.f32 %v871_v37, %v832_v35  ;;  %p2170_p4 = pnand %p2169_p5, %p2163_p12 }
 0x298   : > { %1933 = vmatmul.mubr.f32.gmra.mxu1 %v888_v38 }
 0x299   : > { %v876_v41 = vpop.permute.xlu1 %875 }
 0x29a   : > { %v889_v42 = vmul.f32 %v876_v41, %v833_v39 }
 0x29c   : > { %1935 = vmatprep.mubr.f32.mxu1 %v889_v42 }
 0x29d   : > { %v881_v44 = vpop.permute.xlu1 %880 }
 0x29e   : > { %v890_v45 = vmul.f32 %v881_v44, %v834_v43 }
 0x2a0   : > { %1936 = vmatmul.mubr.f32.gmra.mxu1 %v890_v45 }
 0x2a1   : > { %1946 = vmatprep.mubr.msk.f32.mxu1 %vm585_vm0, %v996_v46 }
 0x2a4   : > { %1947 = vmatmul.mubr.msk.f32.vlgmr.msra.gmra.mxu1 %vm585_vm0, %v997_v47 }
 0x2a5   : > { %1949 = vmatprep.mubr.msk.f32.mxu1 %vm585_vm0, %v998_v48  ;;  %1959 = vmatpush3.msra.mxu1 %v1007_v30 }
 0x2a6   : > { %1960 = vmatprep.subr.mxu1 %v1006_v49 }
 0x2a7   : > { %1961 = vmatpush3.msra.mxu1 %v1006_v49 }
 0x2a8   : > { %1950 = vmatmul.mubr.msk.f32.gmra.mxu1 %vm585_vm0, %v999_v50  ;;  %1962 = vmatprep.subr.mxu1 %v1005_v56 }
 0x2a9   : > { %1952 = vmatprep.mubr.msk.f32.mxu1 %vm585_vm0, %v1000_v52  ;;  %1963 = vmatpush3.msra.mxu1 %v1005_v56 }
 0x2aa   : > { %1964 = vmatprep.subr.mxu1 %v1004_v57 }
 0x2ab   : > { %1965 = vmatpush3.msra.mxu1 %v1004_v57 }
 0x2ac   : > { %1953 = vmatmul.mubr.msk.f32.gmra.mxu1 %vm585_vm0, %v1001_v51 }
 0x2ad   : > { %1955 = vmatprep.mubr.msk.f32.mxu1 %vm585_vm0, %v1002_v54 }
 0x2b0   : > { %1956 = vmatmul.mubr.msk.f32.gmra.mxu1 %vm585_vm0, %v1003_v55 }
 0x349   : > { %v1928_v58 = vpop.f32.mrf.mxu1 }
 0x34b   : > { %v957_v59 = vpop.f32.mrf.mxu1 }
 0x34c   : > { %1966 = vmatprep.mubr.msk.f32.mxu1 %vm585_vm0, %v957_v59 }
 0x34d   : > { %1967 = vmatmul.mubr.msk.f32.vlgmr.msra.gmra.mxu1 %vm585_vm0, %v1928_v58 }
 0x350   : > { %v1931_v63 = vpop.f32.mrf.mxu1 }
 0x352   : > { %v967_v0 = vpop.f32.mrf.mxu1 }
 0x353   : > { %1969 = vmatprep.mubr.msk.f32.mxu1 %vm585_vm0, %v967_v0 }
 0x354   : > { %1970 = vmatmul.mubr.msk.f32.gmra.mxu1 %vm585_vm0, %v1931_v63 }
 0x358   : > { %v1934_v1 = vpop.f32.mrf.mxu1 }
 0x35a   : > { %v977_v2 = vpop.f32.mrf.mxu1 }
 0x35b   : > { %1972 = vmatprep.mubr.msk.f32.mxu1 %vm585_vm0, %v977_v2 }
 0x35c   : > { %1973 = vmatmul.mubr.msk.f32.gmra.mxu1 %vm585_vm0, %v1934_v1 }
 0x360   : > { %v1937_v3 = vpop.f32.mrf.mxu1 }
 0x362   : > { %v987_v4 = vpop.f32.mrf.mxu1 }
 0x363   : > { %1975 = vmatprep.mubr.msk.f32.mxu1 %vm585_vm0, %v987_v4 }
 0x364   : > { %1976 = vmatmul.mubr.msk.f32.gmra.mxu1 %vm585_vm0, %v1937_v3 }
 0x365   : > { %2173 = shalt.err (!%p2170_p4)
}
 0x366   : > { %s2174_s23 = scalar_lea.hbm %s1492_s25, 128  ;;  %s2178_s29 = scalar_lea.hbm %s2775_s9, 384 }
 0x367   : > { %p2175_p6 = scmp.ne.s32.totalorder %s1492_s25, %s2174_s23  ;;  %p2179_p10 = scmp.lt.s32.totalorder %s1492_s25, %s2775_s9 }
 0x368   : > { %p2180_p13 = scmp.lt.s32.totalorder %s2178_s29, %s2174_s23 }
 0x369   : > { %p2176_p0 = pnand %p2175_p6, %p2385_p9 }
 0x36a   : > { %p2181_p8 = por %p2180_p13, %p2179_p10 }
 0x36b   : > { %p2177_p7 = pneg %p2176_p0 }
 0x36d   : > { %p2182_p1 = pnand %p2181_p8, %p2177_p7 }
 0x36f   : > { %2185 = shalt.err (!%p2182_p1)
}
 0x370   : > { %1983 = dma.vmem_to_hbm [thread:$0]  (%p2385_p9), %s1495_s19, 128, %s1492_s25, %s1466_s27   ;;  %v1948_v53 = vpop.f32.mrf.mxu1  ;;  %v1297_v51 = vpop.permute.xlu1 %1296 }
 0x371   : > { %s556_s20 = scalar_lea.vmem %s2773_s7, %s2466_s24  ;;  %s512_s24 = scalar_lea.vmem [#allocation7], %s1717_s18 }
 0x372   : > { %v1102_v26 = vpop.f32.mrf.mxu1  ;;  %v1766_v34 = vld [vmem:[%s556_s20] ss:$0 sm:$0xff]  ;;  %s1480_s25 = sshll.u32 %s512_s24, 4  ;;  %s2797_s16 = sld [smem:[#allocation20_spill]]  ;;  %s1481_s25 = int_to_ptr.vmem [resolvable:$true] %s1480_s25 }
 0x373   : > { %s1461_s23 = scalar_lea.sflag [#allocation4], %s2447_s11  ;;  %s2186_s18 = scalar_lea.vmem %s1481_s25, 128 }
 0x374   : > { %v1951_v27 = vpop.f32.mrf.mxu1  ;;  %p2187_p12 = scmp.ne.s32.totalorder %s1481_s25, %s2186_s18  ;;  %s2283_s30 = smov [#allocation7]  }
 0x375   : > { %s2190_s21 = sshll.u32 %s2283_s30, 4  ;;  %s2191_s21 = int_to_ptr.vmem [resolvable:$false] %s2190_s21 }
 0x376   : > { %v1112_v28 = vpop.f32.mrf.mxu1  ;;  %p2188_p2 = pnand %p2187_p12, %p2385_p9  ;;  %s2192_s12 = scalar_lea.vmem %s2191_s21, 256 }
 0x377   : > { %p2193_p5 = scmp.lt.s32.totalorder %s1481_s25, %s2191_s21  ;;  %p2194_p4 = scmp.lt.s32.totalorder %s2192_s12, %s2186_s18 }
 0x378   : > { %v1954_v29 = vpop.f32.mrf.mxu1  ;;  %s2723_s28 = scalar_lea.hbm %s2797_s16, %s1769_s26  ;;  %p2189_p3 = pneg %p2188_p2 }
 0x379   : > { %p2195_p6 = por %p2194_p4, %p2193_p5 }
 0x37a   : > { %v1122_v30 = vpop.f32.mrf.mxu1 }
 0x37b   : > { %p2196_p0 = pnand %p2195_p6, %p2189_p3 }
 0x37c   : > { %v1957_v31 = vpop.f32.mrf.mxu1 }
 0x37e   : > { %v1132_v32 = vpop.f32.mrf.mxu1 }
 0x40d   : > { %v1968_v33 = vpop.f32.mrf.mxu1 }
 0x40e   : > { %v1237_v35 = vadd.f32 %v1968_v33, %v1948_v53 }
 0x40f   : > { %v1231_v36 = vpop.f32.mrf.mxu1 }
 0x410   : > { %v1278_v37 = vadd.f32 %v1766_v34, %v1237_v35  ;;  %v1232_v38 = vadd.f32 %v1231_v36, %v1102_v26 }
 0x412   : > { %2088 = vtanh.f32 %v1278_v37  ;;  %v1277_v39 = vadd.f32 %v1766_v34, %v1232_v38 }
 0x414   : > { %2090 = vtanh.f32 %v1277_v39  ;;  %v1971_v40 = vpop.f32.mrf.mxu1 }
 0x415   : > { %v1247_v41 = vadd.f32 %v1971_v40, %v1951_v27 }
 0x416   : > { %v1241_v42 = vpop.f32.mrf.mxu1 }
 0x417   : > { %v1280_v43 = vadd.f32 %v1766_v34, %v1247_v41  ;;  %v1242_v44 = vadd.f32 %v1241_v42, %v1112_v28 }
 0x419   : > { %2092 = vtanh.f32 %v1280_v43  ;;  %v1279_v45 = vadd.f32 %v1766_v34, %v1242_v44 }
 0x41b   : > { %2094 = vtanh.f32 %v1279_v45 }
 0x41c   : > { %v1974_v46 = vpop.f32.mrf.mxu1 }
 0x41d   : > { %v1257_v47 = vadd.f32 %v1974_v46, %v1954_v29 }
 0x41e   : > { %v1251_v48 = vpop.f32.mrf.mxu1 }
 0x41f   : > { %v2089_v49 = vpop.eup %2088  ;;  %v1282_v50 = vadd.f32 %v1766_v34, %v1257_v47  ;;  %v1252_v52 = vadd.f32 %v1251_v48, %v1122_v30 }
 0x420   : > { %v1300_v55 = vmul.f32 %v2089_v49, %v1297_v51 }
 0x421   : > { %v2091_v54 = vpop.eup %2090  ;;  %2096 = vtanh.f32 %v1282_v50  ;;  %v1281_v56 = vadd.f32 %v1766_v34, %v1252_v52 }
 0x422   : > { %v1299_v57 = vmul.f32 %v2091_v54, %v1297_v51  ;;  %v1314_v59 = vsel %vm585_vm0, %v1300_v55, 0.0 }
 0x423   : > { %2098 = vtanh.f32 %v1281_v56  ;;  %v1315_v6 = vrot.slane %v1314_v59, 4 }
 0x424   : > { %v1977_v58 = vpop.f32.mrf.mxu1  ;;  %v1307_v63 = vsel %vm585_vm0, %v1299_v57, 0.0 }
 0x425   : > { %v1267_v0 = vadd.f32 %v1977_v58, %v1957_v31  ;;  %v1308_v7 = vrot.slane %v1307_v63, 4  ;;  %v1316_v13 = vadd.f32 %v1315_v6, %v1314_v59 }
 0x426   : > { %v2093_v1 = vpop.eup %2092  ;;  %v1261_v2 = vpop.f32.mrf.mxu1 }
 0x427   : > { %v1302_v3 = vmul.f32 %v2093_v1, %v1297_v51  ;;  %v1284_v4 = vadd.f32 %v1766_v34, %v1267_v0  ;;  %v1262_v8 = vadd.f32 %v1261_v2, %v1132_v32  ;;  %v1309_v14 = vadd.f32 %v1308_v7, %v1307_v63 }
 0x428   : > { %v2095_v5 = vpop.eup %2094  ;;  %v1317_v61 = vrot.slane %v1316_v13, 2 }
 0x429   : > { %v1301_v9 = vmul.f32 %v2095_v5, %v1297_v51  ;;  %v1328_v10 = vsel %vm585_vm0, %v1302_v3, 0.0  ;;  %2100 = vtanh.f32 %v1284_v4  ;;  %v1283_v11 = vadd.f32 %v1766_v34, %v1262_v8 }
 0x42a   : > { %v1329_v16 = vrot.slane %v1328_v10, 4  ;;  %v1310_v20 = vrot.slane %v1309_v14, 2  ;;  %v1318_v27 = vadd.f32 %v1317_v61, %v1316_v13 }
 0x42b   : > { %v1321_v12 = vsel %vm585_vm0, %v1301_v9, 0.0  ;;  %2102 = vtanh.f32 %v1283_v11 }
 0x42c   : > { %v1322_v15 = vrot.slane %v1321_v12, 4  ;;  %v1330_v21 = vadd.f32 %v1329_v16, %v1328_v10  ;;  %v1311_v53 = vadd.f32 %v1310_v20, %v1309_v14  ;;  %v1319_v37 = vrot.slane %v1318_v27, 1 }
 0x42e   : > { %v2097_v17 = vpop.eup %2096  ;;  %v1323_v18 = vadd.f32 %v1322_v15, %v1321_v12  ;;  %v1331_v28 = vrot.slane %v1330_v21, 2  ;;  %v1312_v33 = vrot.slane %v1311_v53, 1  ;;  %v1320_v52 = vadd.f32 %v1319_v37, %v1318_v27 }
 0x42f   : > { %v1304_v60 = vmul.f32 %v2097_v17, %v1297_v51 }
 0x430   : > { %v2099_v19 = vpop.eup %2098  ;;  %v1324_v62 = vrot.slane %v1323_v18, 2  ;;  %v1332_v38 = vadd.f32 %v1331_v28, %v1330_v21  ;;  %v1313_v45 = vadd.f32 %v1312_v33, %v1311_v53 }
 0x431   : > { %v1342_v22 = vsel %vm585_vm0, %v1304_v60, 0.0  ;;  %v1303_v23 = vmul.f32 %v2099_v19, %v1297_v51 }
 0x432   : > { %v1343_v24 = vrot.slane %v1342_v22, 4  ;;  %v1325_v29 = vadd.f32 %v1324_v62, %v1323_v18  ;;  %v1333_v54 = vrot.slane %v1332_v38, 1  ;;  %v1372_v58 = vsel %vm1371_vm1, %v1320_v52, %v1313_v45 }
 0x433   : > { %v1335_v25 = vsel %vm585_vm0, %v1303_v23, 0.0 }
 0x434   : > { %v1336_v26 = vrot.slane %v1335_v25, 4  ;;  %v1344_v30 = vadd.f32 %v1343_v24, %v1342_v22  ;;  %v1326_v39 = vrot.slane %v1325_v29, 1  ;;  %v1334_v1 = vadd.f32 %v1333_v54, %v1332_v38 }
 0x436   : > { %v1337_v31 = vadd.f32 %v1336_v26, %v1335_v25  ;;  %v2101_v32 = vpop.eup %2100  ;;  %v1345_v40 = vrot.slane %v1344_v30, 2  ;;  %v1327_v47 = vadd.f32 %v1326_v39, %v1325_v29 }
 0x437   : > { %v1306_v35 = vmul.f32 %v2101_v32, %v1297_v51 }
 0x438   : > { %v1338_v34 = vrot.slane %v1337_v31, 2  ;;  %v2103_v36 = vpop.eup %2102  ;;  %v1346_v55 = vadd.f32 %v1345_v40, %v1344_v30 }
 0x439   : > { %v1356_v42 = vsel %vm585_vm0, %v1306_v35, 0.0  ;;  %v1305_v43 = vmul.f32 %v2103_v36, %v1297_v51  ;;  %v1374_v51 = vsel %vm1373_vm2, %v1327_v47, %v1372_v58 }
 0x43a   : > { %v1339_v41 = vadd.f32 %v1338_v34, %v1337_v31  ;;  %v1357_v44 = vrot.slane %v1356_v42, 4  ;;  %v1347_v2 = vrot.slane %v1346_v55, 1  ;;  %v1376_v5 = vsel %vm1375_vm3, %v1334_v1, %v1374_v51 }
 0x43b   : > { %v1349_v46 = vsel %vm585_vm0, %v1305_v43, 0.0 }
 0x43c   : > { %v1350_v48 = vrot.slane %v1349_v46, 4  ;;  %v1340_v49 = vrot.slane %v1339_v41, 1  ;;  %v1358_v50 = vadd.f32 %v1357_v44, %v1356_v42  ;;  %v1348_v8 = vadd.f32 %v1347_v2, %v1346_v55 }
 0x43e   : > { %v1351_v56 = vadd.f32 %v1350_v48, %v1349_v46  ;;  %v1359_v57 = vrot.slane %v1358_v50, 2  ;;  %v1341_v59 = vadd.f32 %v1340_v49, %v1339_v41 }
 0x440   : > { %v1352_v63 = vrot.slane %v1351_v56, 2  ;;  %v1360_v0 = vadd.f32 %v1359_v57, %v1358_v50  ;;  %v1378_v7 = vsel %vm1377_vm4, %v1341_v59, %v1376_v5 }
 0x441   : > { %v1380_v11 = vsel %vm1379_vm6, %v1348_v8, %v1378_v7 }
 0x442   : > { %v1353_v3 = vadd.f32 %v1352_v63, %v1351_v56  ;;  %v1361_v4 = vrot.slane %v1360_v0, 1 }
 0x444   : > { %v1354_v6 = vrot.slane %v1353_v3, 1  ;;  %v1362_v10 = vadd.f32 %v1361_v4, %v1360_v0 }
 0x446   : > { %v1355_v9 = vadd.f32 %v1354_v6, %v1353_v3 }
 0x448   : > { %v1382_v12 = vsel %vm1381_vm7, %v1355_v9, %v1380_v11 }
 0x449   : > { %v1384_v13 = vsel %vm1383_vm8, %v1362_v10, %v1382_v12 }
 0x44a   : > { %1386 = vst.msk [vmem:[%s512_s24] sm:$0xff] %vm585_vm0, %v1384_v13 }
 0x44b   : > { %2199 = shalt.err (!%p2196_p0)
}
 0x44c   : > { %s2200_s26 = scalar_lea.hbm %s2723_s28, 128  ;;  %s2204_s17 = scalar_lea.hbm %s2797_s16, 384 }
 0x44d   : > { %p2201_p7 = scmp.ne.s32.totalorder %s2723_s28, %s2200_s26  ;;  %p2205_p8 = scmp.lt.s32.totalorder %s2723_s28, %s2797_s16 }
 0x44e   : > { %p2206_p1 = scmp.lt.s32.totalorder %s2204_s17, %s2200_s26 }
 0x44f   : > { %p2202_p10 = pnand %p2201_p7, %p2385_p9 }
 0x450   : > { %p2207_p12 = por %p2206_p1, %p2205_p8 }
 0x451   : > { %p2203_p13 = pneg %p2202_p10 }
 0x453   : > { %p2208_p2 = pnand %p2207_p12, %p2203_p13 }
 0x455   : > { %2211 = shalt.err (!%p2208_p2)
}
 0x456   : > { %1982 = dma.vmem_to_hbm [thread:$0]  (%p2385_p9), %s1481_s25, 128, %s2723_s28, %s1461_s23  }
 0x457 PF: > { %s2798_s8 = sld [smem:[#allocation14_spill]]  ;;  %p2001_p3 = scmp.ge.s32.totalorder %s2274_s14, 2 }
 0x459   : > { %p1994_p5 = pnand %p2001_p3, %p2392_p11 }
 0x45b   : > { %p1995_p4 = pneg %p1994_p5 }
 0x45d   : > { %s1506_s24 = sand.u32 1, %s2798_s8  }
 0x45e   : > { %s1507_s19 = scalar_lea.sflag [#allocation4], %s1506_s24 }
 0x45f   : > { %2245 = dma.done.wait (%p1995_p4), %s1507_s19, 128  }
 0x460   : > { %2247 = vsyncadd (%p1995_p4), %s1507_s19, 4294967168  ;;  %s1516_s27 = scalar_lea.sflag [#allocation9], %s1506_s24 }
 0x461   : > { %2249 = dma.done.wait (%p1995_p4), %s1516_s27, 128  }
 0x462   : > { %2251 = vsyncadd (%p1995_p4), %s1516_s27, 4294967168  ;;  %s32_s14 = sadd.s32 1, %s2274_s14   ;;  %s2800_s22 = sld [smem:[#allocation15_spill]] }
 0x463   : > { %p29_p6 = scmp.ge.s32.totalorder %s32_s14, 5   ;;  %s2801_s11 = sld [smem:[#allocation17_spill]] }
 0x464   : > { %s2802_s25 = sld [smem:[#allocation16_spill]]  ;;  %s2803_s30 = smov %s2258_s10 }
 0x465   : > { %s2805_s12 = smov %s2270_s13 }
 0x466   :  { %31 = sbr.rel (!%p29_p6) target bundleno = 13 (0xd), region = 142 }
 0x468   : > { %s2804_s10 = smov %s2800_s22 }
 0x46a   : > { %s2806_s13 = smov %s2802_s25 }
 0x46b   :  { %1521 = vsyncpa [#allocation3], 1 }
 0x46c   :  { %1523 = vsyncpa [#allocation3 + $0x1], 1 }
 0x46d   :  { %1524 = vsyncpa [#allocation6], 1 }
 0x46e   :  { %1526 = vsyncpa [#allocation6 + $0x1], 1 }
 0x46f   :  { %1527 = vsyncpa [#allocation4], 1 }
 0x470   :  { %1529 = vsyncpa [#allocation4 + $0x1], 1 }
 0x471   :  { %1530 = vsyncpa [#allocation9], 1 }
 0x472   :  { %1532 = vsyncpa [#allocation9 + $0x1], 1 }

</bundles_post_ra>
